<compile_context>
chip_gen: v5e
topology: v5e:2x2
jax: 0.10.0
libtpu: 0.0.40
codegen_flags: <defaults>
</compile_context>

<pallas_src>
import functools

import jax
import jax.numpy as jnp
from jax.experimental import pallas as pl
from jax.experimental.pallas import tpu as pltpu


def _round_up(x, m):
    return (x + m - 1) // m * m


def _const_spec(arr):
    nd = arr.ndim
    return pl.BlockSpec(arr.shape, lambda i, _nd=nd: (0,) * _nd)


# ----------------------------------------------------------------------------
# Static architecture plan (replaces the torch.no_grad() shape probe)
# ----------------------------------------------------------------------------
def make_plan(c_in, H, W, action_dim):
    ho1, wo1 = (H - 8) // 4 + 1, (W - 8) // 4 + 1      # conv1 (k=8, s=4)
    ho2, wo2 = (ho1 - 4) // 2 + 1, (wo1 - 4) // 2 + 1  # conv2 (k=4, s=2)
    ho3, wo3 = ho2 - 2, wo2 - 2                        # conv3 (k=3, s=1)
    return dict(c_in=c_in, H=H, W=W, action_dim=action_dim,
                cs1=16 * c_in,
                hs1=ho1 + 1, ws1=wo1 + 1,              # factor-4 s2d extent
                hs2=ho2 + 1, ws2=wo2 + 1,              # conv2 s2d extent
                ho1=ho1, wo1=wo1, ho2=ho2, wo2=wo2, ho3=ho3, wo3=wo3,
                c3=64, n_flatten=64 * ho3 * wo3)


# ----------------------------------------------------------------------------
# Pallas kernel 1: fused conv stack (conv1+ReLU -> conv2+ReLU -> conv3+ReLU)
# ----------------------------------------------------------------------------
def _conv_stack_kernel(xp00_ref, xp01_ref, xp10_ref, xp11_ref,
                       w1_ref, b1_ref, w2_ref, b2_ref, w3_ref, b3_ref,
                       o_ref, *, bt, hs2, ws2, cs1, ho2, wo2, ho3, wo3):
    """One batch tile (bt images) per grid step; all activations stay in VMEM.

    xp??_ref : (bt, hs2+1, ws2+1, cs1)  parity-phase decomposed s2d(4) input
    w1_ref   : (4, 4, cs1, 128)         conv1 (class, tap) lane-placed weights
    b1_ref   : (1, 128)   conv1 bias tiled over the 4 parity classes
    w2_ref   : (2, 2, 128, 64)          conv2 s2d tap weights
    w3_ref   : (3, 3, 64, 64)           conv3 tap weights
    o_ref    : (bt, ho3*wo3, 64)        conv3 output, real 64 channels
    """
    cdt = w1_ref.dtype
    xpar = (xp00_ref[...], xp01_ref[...], xp10_ref[...], xp11_ref[...])

    # ---- conv1 (8x8, stride 4): emitted directly in conv2's s2d layout -------
    m1 = bt * hs2 * ws2
    acc1 = jnp.zeros((m1, 128), jnp.float32)
    for cls in range(4):                       # output parity class (p, q)
        p, q = cls // 2, cls % 2
        for tap in range(4):                   # s2d tap (a, b)
            a, b = tap // 2, tap % 2
            r, s = p + a, q + b
            win = xpar[(r % 2) * 2 + (s % 2)][:, r // 2:r // 2 + hs2,
                                              s // 2:s // 2 + ws2, :]
            acc1 += jnp.dot(win.reshape(m1, cs1), w1_ref[cls, tap],
                            preferred_element_type=jnp.float32)
    xs2 = jnp.maximum(acc1 + b1_ref[...], 0.0).astype(cdt)
    xs2 = xs2.reshape(bt, hs2, ws2, 128)

    # ---- conv2 (4x4, stride 2) == 2x2 stride-1 conv on the s2d layout --------
    m2 = bt * ho2 * wo2
    acc2 = jnp.zeros((m2, 64), jnp.float32)
    for a in range(2):
        for b in range(2):
            win = xs2[:, a:a + ho2, b:b + wo2, :]
            acc2 += jnp.dot(win.reshape(m2, 128), w2_ref[a, b],
                            preferred_element_type=jnp.float32)
    y2 = jnp.maximum(acc2 + b2_ref[...], 0.0).astype(cdt)
    y2 = y2.reshape(bt, ho2, wo2, 64)

    # ---- conv3 (3x3, stride 1) ------------------------------------------------
    m3 = bt * ho3 * wo3
    acc3 = jnp.zeros((m3, 64), jnp.float32)
    for a in range(3):
        for b in range(3):
            win = y2[:, a:a + ho3, b:b + wo3, :]
            acc3 += jnp.dot(win.reshape(m3, 64), w3_ref[a, b],
                            preferred_element_type=jnp.float32)
    y3 = jnp.maximum(acc3 + b3_ref[...], 0.0)
    o_ref[...] = y3.reshape(bt, ho3 * wo3, 64).astype(o_ref.dtype)


def _conv_batch_tile(B):
    for d in (8, 4, 2):
        if B % d == 0 and B // d >= 2:
            return d
    return 1


def conv_stack(xp_list, w1, b1, w2, b2, w3, b3, *, plan):
    B = xp_list[0].shape[0]
    bt = _conv_batch_tile(B)
    hs2, ws2, cs1 = plan["hs2"], plan["ws2"], plan["cs1"]
    ho2, wo2, ho3, wo3 = plan["ho2"], plan["wo2"], plan["ho3"], plan["wo3"]
    hp, wp = hs2 + 1, ws2 + 1
    kernel = functools.partial(
        _conv_stack_kernel, bt=bt, hs2=hs2, ws2=ws2, cs1=cs1,
        ho2=ho2, wo2=wo2, ho3=ho3, wo3=wo3)

    c_in = plan["c_in"]
    flops = 2 * B * (plan["ho1"] * plan["wo1"] * 64 * c_in * 32
                     + ho2 * wo2 * 16 * 32 * 64
                     + ho3 * wo3 * 9 * 64 * 64)
    bytes_accessed = int(sum(a.size * a.dtype.itemsize
                             for a in (list(xp_list) + [w1, b1, w2, b2, w3, b3]))
                         + B * ho3 * wo3 * 64 * xp_list[0].dtype.itemsize)

    xp_spec = pl.BlockSpec((bt, hp, wp, cs1), lambda i: (i, 0, 0, 0))
    return pl.pallas_call(
        kernel,
        out_shape=jax.ShapeDtypeStruct((B, ho3 * wo3, 64), xp_list[0].dtype),
        grid=(B // bt,),
        in_specs=[xp_spec, xp_spec, xp_spec, xp_spec,
                  _const_spec(w1), _const_spec(b1),
                  _const_spec(w2), _const_spec(b2),
                  _const_spec(w3), _const_spec(b3)],
        out_specs=pl.BlockSpec((bt, ho3 * wo3, 64), lambda i: (i, 0, 0)),
        compiler_params=pltpu.CompilerParams(dimension_semantics=("parallel",)),
        cost_estimate=pl.CostEstimate(flops=int(flops), transcendentals=0,
                                      bytes_accessed=bytes_accessed),
    )(*xp_list, w1, b1, w2, b2, w3, b3)


# ----------------------------------------------------------------------------
# Pallas kernel 2: fused MLP head (flatten_linear -> fc1 -> fc2 -> fc3)
# ----------------------------------------------------------------------------
def _mlp_head_kernel(x_ref, w0_ref, b0_ref, w1_ref, b1_ref, w2_ref, b2_ref,
                     w3_ref, b3_ref, o_ref):
    cdt = w0_ref.dtype
    h = jnp.dot(x_ref[...], w0_ref[...], preferred_element_type=jnp.float32) + b0_ref[...]
    h = jnp.maximum(h, 0.0).astype(cdt)
    h = jnp.dot(h, w1_ref[...], preferred_element_type=jnp.float32) + b1_ref[...]
    h = jnp.maximum(h, 0.0).astype(cdt)
    h = jnp.dot(h, w2_ref[...], preferred_element_type=jnp.float32) + b2_ref[...]
    h = jnp.maximum(h, 0.0).astype(cdt)
    o = jnp.dot(h, w3_ref[...], preferred_element_type=jnp.float32) + b3_ref[...]
    o_ref[...] = o.astype(o_ref.dtype)


def _head_batch_tile(B):
    for d in (128, 64, 32, 16, 8):
        if B % d == 0 and B // d >= 2:
            return d
    return B


def mlp_head(x, w0, b0, w1, b1, w2, b2, w3, b3):
    B, k0 = x.shape
    fpad, hpad, apad = w0.shape[1], w1.shape[1], w3.shape[1]
    tm = _head_batch_tile(B)
    flops = 2 * B * (k0 * fpad + fpad * hpad + hpad * hpad + hpad * apad)
    bytes_accessed = int(sum(a.size * a.dtype.itemsize
                             for a in (x, w0, b0, w1, b1, w2, b2, w3, b3))
                         + B * apad * 4)
    return pl.pallas_call(
        _mlp_head_kernel,
        out_shape=jax.ShapeDtypeStruct((B, apad), jnp.float32),
        grid=(B // tm,),
        in_specs=[pl.BlockSpec((tm, k0), lambda i: (i, 0)),
                  _const_spec(w0), _const_spec(b0), _const_spec(w1), _const_spec(b1),
                  _const_spec(w2), _const_spec(b2), _const_spec(w3), _const_spec(b3)],
        out_specs=pl.BlockSpec((tm, apad), lambda i: (i, 0)),
        compiler_params=pltpu.CompilerParams(dimension_semantics=("parallel",)),
        cost_estimate=pl.CostEstimate(flops=int(flops), transcendentals=0,
                                      bytes_accessed=bytes_accessed),
    )(x, w0, b0, w1, b1, w2, b2, w3, b3)


# ----------------------------------------------------------------------------
# Plain-JAX glue: input relayout (NCHW -> NHWC -> s2d(4) -> 2x2 parity phases).
# Runs once on the raw input (the smallest tensor in the network).
# ----------------------------------------------------------------------------
def prep_input(x, plan, compute_dtype):
    B = x.shape[0]
    c, hs1, ws1, cs1 = plan["c_in"], plan["hs1"], plan["ws1"], plan["cs1"]
    hs2, ws2 = plan["hs2"], plan["ws2"]
    x = jnp.transpose(x, (0, 2, 3, 1)).astype(compute_dtype)      # NHWC
    x = x[:, :4 * hs1, :4 * ws1, :]
    xs1 = x.reshape(B, hs1, 4, ws1, 4, c).transpose(0, 1, 3, 2, 4, 5)
    xs1 = xs1.reshape(B, hs1, ws1, cs1)                            # s2d factor 4
    Hp, Wp = 2 * (hs2 + 1), 2 * (ws2 + 1)
    xs1 = jnp.pad(xs1, ((0, 0), (0, Hp - hs1), (0, Wp - ws1), (0, 0)))
    xp = xs1.reshape(B, hs2 + 1, 2, ws2 + 1, 2, cs1).transpose(0, 2, 4, 1, 3, 5)
    # xp[b, r0, s0, m, n, :] == xs1[b, 2m+r0, 2n+s0, :]
    return [xp[:, r0, s0] for r0 in range(2) for s0 in range(2)]


# ----------------------------------------------------------------------------
# One-time parameter relayout (tap matrices, parity-class lane placement,
# flatten permutation, lane-dense padding of head output dims).
# ----------------------------------------------------------------------------
def prepare_params(params, plan, compute_dtype=jnp.bfloat16):
    c_in, cs1 = plan["c_in"], plan["cs1"]

    # conv1: s2d(4) tap weights -> 4 parity classes x 4 taps, lane-placed (128).
    w1 = params["conv1_w"].astype(jnp.float32)                     # (32, C, 8, 8)
    w1s = w1.reshape(32, c_in, 2, 4, 2, 4).transpose(2, 4, 3, 5, 1, 0)
    w1s = w1s.reshape(2, 2, cs1, 32)                               # (a, b, cs1, 32)
    w1cls = jnp.zeros((4, 4, cs1, 128), jnp.float32)
    for cls in range(4):
        w1cls = w1cls.at[cls, :, :, 32 * cls:32 * (cls + 1)].set(
            w1s.reshape(4, cs1, 32))
    b1 = jnp.tile(params["conv1_b"].astype(jnp.float32), 4).reshape(1, 128)

    # conv2: s2d(2) tap weights against the 128-channel parity layout.
    w2 = params["conv2_w"].astype(jnp.float32)                     # (64, 32, 4, 4)
    w2s = w2.reshape(64, 32, 2, 2, 2, 2).transpose(2, 4, 3, 5, 1, 0)
    w2s = w2s.reshape(2, 2, 128, 64)
    b2 = params["conv2_b"].astype(jnp.float32).reshape(1, 64)

    # conv3: plain 3x3 tap weights.
    w3s = params["conv3_w"].astype(jnp.float32).transpose(2, 3, 1, 0)   # (3,3,64,64)
    b3 = params["conv3_b"].astype(jnp.float32).reshape(1, 64)

    # Head: permute flatten weight to our (h, w, c) activation order — no zero rows.
    ho3, wo3 = plan["ho3"], plan["wo3"]
    fl_w = params["fl_w"].astype(jnp.float32)                      # (64*h3*w3, F)
    F = fl_w.shape[1]
    hidden = params["fc1_w"].shape[1]
    adim = params["fc3_w"].shape[1]
    fpad, hpad, apad = _round_up(F, 128), _round_up(hidden, 128), _round_up(adim, 128)
    w0 = fl_w.reshape(64, ho3, wo3, F).transpose(1, 2, 0, 3).reshape(ho3 * wo3 * 64, F)
    w0 = jnp.pad(w0, ((0, 0), (0, fpad - F)))
    b0 = jnp.pad(params["fl_b"].astype(jnp.float32), (0, fpad - F)).reshape(1, fpad)
    wf1 = jnp.pad(params["fc1_w"].astype(jnp.float32), ((0, fpad - F), (0, hpad - hidden)))
    bf1 = jnp.pad(params["fc1_b"].astype(jnp.float32), (0, hpad - hidden)).reshape(1, hpad)
    wf2 = jnp.pad(params["fc2_w"].astype(jnp.float32), ((0, hpad - hidden), (0, hpad - hidden)))
    bf2 = jnp.pad(params["fc2_b"].astype(jnp.float32), (0, hpad - hidden)).reshape(1, hpad)
    wf3 = jnp.pad(params["fc3_w"].astype(jnp.float32), ((0, hpad - hidden), (0, apad - adim)))
    bf3 = jnp.pad(params["fc3_b"].astype(jnp.float32), (0, apad - adim)).reshape(1, apad)

    return dict(
        conv=dict(w1=w1cls.astype(compute_dtype), b1=b1,
                  w2=w2s.astype(compute_dtype), b2=b2,
                  w3=w3s.astype(compute_dtype), b3=b3),
        head=dict(w0=w0.astype(compute_dtype), b0=b0,
                  w1=wf1.astype(compute_dtype), b1=bf1,
                  w2=wf2.astype(compute_dtype), b2=bf2,
                  w3=wf3.astype(compute_dtype), b3=bf3))


# ----------------------------------------------------------------------------
# Deterministic synthetic parameters (PyTorch-style layouts)
# ----------------------------------------------------------------------------
def init_params(key, n_input_channels, n_flatten, features_dim, hidden_dim, action_dim):
    def dense(k, shape, scale=0.05):
        return scale * jax.random.normal(k, shape, dtype=jnp.float32)

    ks = jax.random.split(key, 16)
    p = {}
    p["conv1_w"] = dense(ks[0], (32, n_input_channels, 8, 8))
    p["conv1_b"] = dense(ks[1], (32,))
    p["conv2_w"] = dense(ks[2], (64, 32, 4, 4))
    p["conv2_b"] = dense(ks[3], (64,))
    p["conv3_w"] = dense(ks[4], (64, 64, 3, 3))
    p["conv3_b"] = dense(ks[5], (64,))
    p["fl_w"] = dense(ks[6], (n_flatten, features_dim))
    p["fl_b"] = dense(ks[7], (features_dim,))
    p["fc1_w"] = dense(ks[8], (features_dim, hidden_dim))
    p["fc1_b"] = dense(ks[9], (hidden_dim,))
    p["fc2_w"] = dense(ks[10], (hidden_dim, hidden_dim))
    p["fc2_b"] = dense(ks[11], (hidden_dim,))
    p["fc3_w"] = dense(ks[12], (hidden_dim, action_dim))
    p["fc3_b"] = dense(ks[13], (action_dim,))
    return p


# ----------------------------------------------------------------------------
# Forward pass (matches CNN.forward: output_linear(flatten_linear(cnn(obs))))
# ----------------------------------------------------------------------------
def cnn_forward(prepared, observations, *, plan):
    cdt = prepared["conv"]["w1"].dtype
    xp = prep_input(observations, plan, cdt)
    cv = prepared["conv"]
    y3 = conv_stack(xp, cv["w1"], cv["b1"], cv["w2"], cv["b2"], cv["w3"], cv["b3"],
                    plan=plan)                       # (B, h3*w3, 64) real channels
    B = y3.shape[0]
    x = y3.reshape(B, -1)                            # free HBM reshape, matches w0 rows
    hd = prepared["head"]
    out = mlp_head(x, hd["w0"], hd["b0"], hd["w1"], hd["b1"],
                   hd["w2"], hd["b2"], hd["w3"], hd["b3"])
    return out[:, :plan["action_dim"]]


# ----------------------------------------------------------------------------
# Pure-JAX reference (PyTorch layout / semantics) for correctness checks
# ----------------------------------------------------------------------------
def cnn_forward_ref(params, observations):
    def conv(x, w, b, s):
        y = jax.lax.conv_general_dilated(
            x, w, window_strides=(s, s), padding="VALID",
            dimension_numbers=("NCHW", "OIHW", "NCHW"))
        return jnp.maximum(y + b[None, :, None, None], 0.0)

    x = conv(observations, params["conv1_w"], params["conv1_b"], 4)
    x = conv(x, params["conv2_w"], params["conv2_b"], 2)
    x = conv(x, params["conv3_w"], params["conv3_b"], 1)
    x = x.reshape(x.shape[0], -1)
    x = jnp.maximum(x @ params["fl_w"] + params["fl_b"], 0.0)
    x = jnp.maximum(x @ params["fc1_w"] + params["fc1_b"], 0.0)
    x = jnp.maximum(x @ params["fc2_w"] + params["fc2_b"], 0.0)
    return x @ params["fc3_w"] + params["fc3_b"]


if __name__ == "__main__":
    # Small but conv-stack-valid shapes: 36x36 input -> 8x8 -> 3x3 -> 1x1 spatial.
    B, C, H, W = 2, 4, 36, 36
    features_dim, hidden_dim, action_dim = 64, 32, 8

    plan = make_plan(C, H, W, action_dim)
    n_flatten = plan["n_flatten"]            # static conv arithmetic (no shape probe)

    key = jax.random.PRNGKey(0)
    k_obs, k_params = jax.random.split(key)
    observations = jax.random.uniform(k_obs, (B, C, H, W), dtype=jnp.float32)
    params = init_params(k_params, C, n_flatten, features_dim, hidden_dim, action_dim)

    ref = jax.block_until_ready(cnn_forward_ref(params, observations))

    fwd = jax.jit(functools.partial(cnn_forward, plan=plan))

    # 1) f32 compute path: exact check against the reference.
    prep_f32 = prepare_params(params, plan, compute_dtype=jnp.float32)
    out_f32 = jax.block_until_ready(fwd(prep_f32, observations))
    assert out_f32.shape == (B, action_dim), out_f32.shape
    assert jnp.allclose(out_f32, ref, atol=1e-4, rtol=1e-4), "f32 path mismatch"

    # 2) bf16 MXU path (default for v6e/v7x): loose check against f32 reference.
    prep_bf16 = prepare_params(params, plan, compute_dtype=jnp.bfloat16)
    out_bf16 = jax.block_until_ready(fwd(prep_bf16, observations))
    assert out_bf16.shape == (B, action_dim), out_bf16.shape
    assert jnp.allclose(out_bf16, ref, atol=5e-2, rtol=5e-2), "bf16 path mismatch"

    print("KERNEL_OK")
</pallas_src>

<mosaic_0001>
module attributes {stable_mosaic.version = 11 : i64} {
  func.func @_mlp_head_kernel(%arg0: i32, %arg1: memref<2x64xf32, #tpu.memory_space<vmem>>, %arg2: memref<64x128xf32, #tpu.memory_space<vmem>>, %arg3: memref<1x128xf32, #tpu.memory_space<vmem>>, %arg4: memref<128x128xf32, #tpu.memory_space<vmem>>, %arg5: memref<1x128xf32, #tpu.memory_space<vmem>>, %arg6: memref<128x128xf32, #tpu.memory_space<vmem>>, %arg7: memref<1x128xf32, #tpu.memory_space<vmem>>, %arg8: memref<128x128xf32, #tpu.memory_space<vmem>>, %arg9: memref<1x128xf32, #tpu.memory_space<vmem>>, %arg10: memref<2x128xf32, #tpu.memory_space<vmem>>) attributes {dimension_semantics = [#tpu.dimension_semantics<parallel>], iteration_bounds = array<i64: 1>, scalar_prefetch = 0 : i64, scratch_operands = 0 : i64, tpu.core_type = #tpu.core_type<tc>, window_params = [{transform_indices = @transform_0, window_bounds = array<i64: 2, 64>}, {pipeline_mode = #tpu.pipeline_mode<synchronous>, transform_indices = @transform_1, window_bounds = array<i64: 64, 128>}, {pipeline_mode = #tpu.pipeline_mode<synchronous>, transform_indices = @transform_2, window_bounds = array<i64: 1, 128>}, {pipeline_mode = #tpu.pipeline_mode<synchronous>, transform_indices = @transform_3, window_bounds = array<i64: 128, 128>}, {pipeline_mode = #tpu.pipeline_mode<synchronous>, transform_indices = @transform_4, window_bounds = array<i64: 1, 128>}, {pipeline_mode = #tpu.pipeline_mode<synchronous>, transform_indices = @transform_5, window_bounds = array<i64: 128, 128>}, {pipeline_mode = #tpu.pipeline_mode<synchronous>, transform_indices = @transform_6, window_bounds = array<i64: 1, 128>}, {pipeline_mode = #tpu.pipeline_mode<synchronous>, transform_indices = @transform_7, window_bounds = array<i64: 128, 128>}, {pipeline_mode = #tpu.pipeline_mode<synchronous>, transform_indices = @transform_8, window_bounds = array<i64: 1, 128>}, {transform_indices = @transform_9, window_bounds = array<i64: 2, 128>}]} {
    %c0 = arith.constant 0 : index
    %c0_0 = arith.constant 0 : index
    %0 = vector.load %arg1[%c0, %c0_0] : memref<2x64xf32, #tpu.memory_space<vmem>>, vector<2x64xf32>
    %c0_1 = arith.constant 0 : index
    %c0_2 = arith.constant 0 : index
    %1 = vector.load %arg2[%c0_1, %c0_2] : memref<64x128xf32, #tpu.memory_space<vmem>>, vector<64x128xf32>
    %cst = arith.constant dense<0.000000e+00> : vector<2x128xf32>
    %2 = tpu.matmul %0, %1, %cst {dimension_numbers = #tpu.dot_dimension_numbers<[1], [0], [0], [1], [0, 0, 1, 1], [], []>} : vector<2x64xf32>, vector<64x128xf32>, vector<2x128xf32> -> vector<2x128xf32>
    %c0_3 = arith.constant 0 : index
    %c0_4 = arith.constant 0 : index
    %3 = vector.load %arg3[%c0_3, %c0_4] : memref<1x128xf32, #tpu.memory_space<vmem>>, vector<1x128xf32>
    %4 = vector.broadcast %3 : vector<1x128xf32> to vector<2x128xf32>
    %5 = arith.addf %2, %4 : vector<2x128xf32>
    %cst_5 = arith.constant 0.000000e+00 : f32
    %6 = vector.broadcast %cst_5 : f32 to vector<2x128xf32>
    %7 = arith.maximumf %5, %6 : vector<2x128xf32>
    %c0_6 = arith.constant 0 : index
    %c0_7 = arith.constant 0 : index
    %8 = vector.load %arg4[%c0_6, %c0_7] : memref<128x128xf32, #tpu.memory_space<vmem>>, vector<128x128xf32>
    %cst_8 = arith.constant dense<0.000000e+00> : vector<2x128xf32>
    %9 = tpu.matmul %7, %8, %cst_8 {dimension_numbers = #tpu.dot_dimension_numbers<[1], [0], [0], [1], [0, 0, 1, 1], [], []>} : vector<2x128xf32>, vector<128x128xf32>, vector<2x128xf32> -> vector<2x128xf32>
    %c0_9 = arith.constant 0 : index
    %c0_10 = arith.constant 0 : index
    %10 = vector.load %arg5[%c0_9, %c0_10] : memref<1x128xf32, #tpu.memory_space<vmem>>, vector<1x128xf32>
    %11 = vector.broadcast %10 : vector<1x128xf32> to vector<2x128xf32>
    %12 = arith.addf %9, %11 : vector<2x128xf32>
    %cst_11 = arith.constant 0.000000e+00 : f32
    %13 = vector.broadcast %cst_11 : f32 to vector<2x128xf32>
    %14 = arith.maximumf %12, %13 : vector<2x128xf32>
    %c0_12 = arith.constant 0 : index
    %c0_13 = arith.constant 0 : index
    %15 = vector.load %arg6[%c0_12, %c0_13] : memref<128x128xf32, #tpu.memory_space<vmem>>, vector<128x128xf32>
    %cst_14 = arith.constant dense<0.000000e+00> : vector<2x128xf32>
    %16 = tpu.matmul %14, %15, %cst_14 {dimension_numbers = #tpu.dot_dimension_numbers<[1], [0], [0], [1], [0, 0, 1, 1], [], []>} : vector<2x128xf32>, vector<128x128xf32>, vector<2x128xf32> -> vector<2x128xf32>
    %c0_15 = arith.constant 0 : index
    %c0_16 = arith.constant 0 : index
    %17 = vector.load %arg7[%c0_15, %c0_16] : memref<1x128xf32, #tpu.memory_space<vmem>>, vector<1x128xf32>
    %18 = vector.broadcast %17 : vector<1x128xf32> to vector<2x128xf32>
    %19 = arith.addf %16, %18 : vector<2x128xf32>
    %cst_17 = arith.constant 0.000000e+00 : f32
    %20 = vector.broadcast %cst_17 : f32 to vector<2x128xf32>
    %21 = arith.maximumf %19, %20 : vector<2x128xf32>
    %c0_18 = arith.constant 0 : index
    %c0_19 = arith.constant 0 : index
    %22 = vector.load %arg8[%c0_18, %c0_19] : memref<128x128xf32, #tpu.memory_space<vmem>>, vector<128x128xf32>
    %cst_20 = arith.constant dense<0.000000e+00> : vector<2x128xf32>
    %23 = tpu.matmul %21, %22, %cst_20 {dimension_numbers = #tpu.dot_dimension_numbers<[1], [0], [0], [1], [0, 0, 1, 1], [], []>} : vector<2x128xf32>, vector<128x128xf32>, vector<2x128xf32> -> vector<2x128xf32>
    %c0_21 = arith.constant 0 : index
    %c0_22 = arith.constant 0 : index
    %24 = vector.load %arg9[%c0_21, %c0_22] : memref<1x128xf32, #tpu.memory_space<vmem>>, vector<1x128xf32>
    %25 = vector.broadcast %24 : vector<1x128xf32> to vector<2x128xf32>
    %26 = arith.addf %23, %25 : vector<2x128xf32>
    %c0_23 = arith.constant 0 : index
    %c0_24 = arith.constant 0 : index
    %27 = vector.load %arg10[%c0_23, %c0_24] : memref<2x128xf32, #tpu.memory_space<vmem>>, vector<2x128xf32>
    tpu.vector_store %arg10[%c0_23, %c0_24], %26 {strides = array<i32>} : memref<2x128xf32, #tpu.memory_space<vmem>>, vector<2x128xf32>,
    return
  }
  func.func @transform_0(%arg0: i32) -> (i32, i32) {
    %c0_i32 = arith.constant 0 : i32
    %c0_i32_0 = arith.constant 0 : i32
    return %arg0, %c0_i32 : i32, i32
  }
  func.func @transform_1(%arg0: i32) -> (i32, i32) {
    %c0_i32 = arith.constant 0 : i32
    %c0_i32_0 = arith.constant 0 : i32
    %c0_i32_1 = arith.constant 0 : i32
    return %c0_i32, %c0_i32_0 : i32, i32
  }
  func.func @transform_2(%arg0: i32) -> (i32, i32) {
    %c0_i32 = arith.constant 0 : i32
    %c0_i32_0 = arith.constant 0 : i32
    %c0_i32_1 = arith.constant 0 : i32
    return %c0_i32, %c0_i32_0 : i32, i32
  }
  func.func @transform_3(%arg0: i32) -> (i32, i32) {
    %c0_i32 = arith.constant 0 : i32
    %c0_i32_0 = arith.constant 0 : i32
    %c0_i32_1 = arith.constant 0 : i32
    return %c0_i32, %c0_i32_0 : i32, i32
  }
  func.func @transform_4(%arg0: i32) -> (i32, i32) {
    %c0_i32 = arith.constant 0 : i32
    %c0_i32_0 = arith.constant 0 : i32
    %c0_i32_1 = arith.constant 0 : i32
    return %c0_i32, %c0_i32_0 : i32, i32
  }
  func.func @transform_5(%arg0: i32) -> (i32, i32) {
    %c0_i32 = arith.constant 0 : i32
    %c0_i32_0 = arith.constant 0 : i32
    %c0_i32_1 = arith.constant 0 : i32
    return %c0_i32, %c0_i32_0 : i32, i32
  }
  func.func @transform_6(%arg0: i32) -> (i32, i32) {
    %c0_i32 = arith.constant 0 : i32
    %c0_i32_0 = arith.constant 0 : i32
    %c0_i32_1 = arith.constant 0 : i32
    return %c0_i32, %c0_i32_0 : i32, i32
  }
  func.func @transform_7(%arg0: i32) -> (i32, i32) {
    %c0_i32 = arith.constant 0 : i32
    %c0_i32_0 = arith.constant 0 : i32
    %c0_i32_1 = arith.constant 0 : i32
    return %c0_i32, %c0_i32_0 : i32, i32
  }
  func.func @transform_8(%arg0: i32) -> (i32, i32) {
    %c0_i32 = arith.constant 0 : i32
    %c0_i32_0 = arith.constant 0 : i32
    %c0_i32_1 = arith.constant 0 : i32
    return %c0_i32, %c0_i32_0 : i32, i32
  }
  func.func @transform_9(%arg0: i32) -> (i32, i32) {
    %c0_i32 = arith.constant 0 : i32
    %c0_i32_0 = arith.constant 0 : i32
    return %arg0, %c0_i32 : i32, i32
  }
}

module attributes {stable_mosaic.version = 11 : i64} {
  func.func @_conv_stack_kernel(%arg0: i32, %arg1: memref<1x5x5x64xf32, #tpu.memory_space<vmem>>, %arg2: memref<1x5x5x64xf32, #tpu.memory_space<vmem>>, %arg3: memref<1x5x5x64xf32, #tpu.memory_space<vmem>>, %arg4: memref<1x5x5x64xf32, #tpu.memory_space<vmem>>, %arg5: memref<4x4x64x128xf32, #tpu.memory_space<vmem>>, %arg6: memref<1x128xf32, #tpu.memory_space<vmem>>, %arg7: memref<2x2x128x64xf32, #tpu.memory_space<vmem>>, %arg8: memref<1x64xf32, #tpu.memory_space<vmem>>, %arg9: memref<3x3x64x64xf32, #tpu.memory_space<vmem>>, %arg10: memref<1x64xf32, #tpu.memory_space<vmem>>, %arg11: memref<1x1x64xf32, #tpu.memory_space<vmem>>) attributes {dimension_semantics = [#tpu.dimension_semantics<parallel>], iteration_bounds = array<i64: 2>, scalar_prefetch = 0 : i64, scratch_operands = 0 : i64, tpu.core_type = #tpu.core_type<tc>, window_params = [{transform_indices = @transform_0, window_bounds = array<i64: 1, 5, 5, 64>}, {transform_indices = @transform_1, window_bounds = array<i64: 1, 5, 5, 64>}, {transform_indices = @transform_2, window_bounds = array<i64: 1, 5, 5, 64>}, {transform_indices = @transform_3, window_bounds = array<i64: 1, 5, 5, 64>}, {pipeline_mode = #tpu.pipeline_mode<synchronous>, transform_indices = @transform_4, window_bounds = array<i64: 4, 4, 64, 128>}, {pipeline_mode = #tpu.pipeline_mode<synchronous>, transform_indices = @transform_5, window_bounds = array<i64: 1, 128>}, {pipeline_mode = #tpu.pipeline_mode<synchronous>, transform_indices = @transform_6, window_bounds = array<i64: 2, 2, 128, 64>}, {pipeline_mode = #tpu.pipeline_mode<synchronous>, transform_indices = @transform_7, window_bounds = array<i64: 1, 64>}, {pipeline_mode = #tpu.pipeline_mode<synchronous>, transform_indices = @transform_8, window_bounds = array<i64: 3, 3, 64, 64>}, {pipeline_mode = #tpu.pipeline_mode<synchronous>, transform_indices = @transform_9, window_bounds = array<i64: 1, 64>}, {transform_indices = @transform_10, window_bounds = array<i64: 1, 1, 64>}]} {
    %c0 = arith.constant 0 : index
    %c0_0 = arith.constant 0 : index
    %c0_1 = arith.constant 0 : index
    %c0_2 = arith.constant 0 : index
    %0 = vector.load %arg1[%c0, %c0_0, %c0_1, %c0_2] : memref<1x5x5x64xf32, #tpu.memory_space<vmem>>, vector<1x5x5x64xf32>
    %c0_3 = arith.constant 0 : index
    %c0_4 = arith.constant 0 : index
    %c0_5 = arith.constant 0 : index
    %c0_6 = arith.constant 0 : index
    %1 = vector.load %arg2[%c0_3, %c0_4, %c0_5, %c0_6] : memref<1x5x5x64xf32, #tpu.memory_space<vmem>>, vector<1x5x5x64xf32>
    %c0_7 = arith.constant 0 : index
    %c0_8 = arith.constant 0 : index
    %c0_9 = arith.constant 0 : index
    %c0_10 = arith.constant 0 : index
    %2 = vector.load %arg3[%c0_7, %c0_8, %c0_9, %c0_10] : memref<1x5x5x64xf32, #tpu.memory_space<vmem>>, vector<1x5x5x64xf32>
    %c0_11 = arith.constant 0 : index
    %c0_12 = arith.constant 0 : index
    %c0_13 = arith.constant 0 : index
    %c0_14 = arith.constant 0 : index
    %3 = vector.load %arg4[%c0_11, %c0_12, %c0_13, %c0_14] : memref<1x5x5x64xf32, #tpu.memory_space<vmem>>, vector<1x5x5x64xf32>
    %cst = arith.constant 0.000000e+00 : f32
    %4 = vector.broadcast %cst : f32 to vector<16x128xf32>
    %5 = vector.extract_strided_slice %0 {offsets = [0, 0, 0, 0], sizes = [1, 4, 4, 64], strides = [1, 1, 1, 1]} : vector<1x5x5x64xf32> to vector<1x4x4x64xf32>
    %6 = vector.shape_cast %5 : vector<1x4x4x64xf32> to vector<16x64xf32>
    %c0_15 = arith.constant 0 : index
    %c0_16 = arith.constant 0 : index
    %c0_17 = arith.constant 0 : index
    %c0_18 = arith.constant 0 : index
    %7 = vector.load %arg5[%c0_15, %c0_16, %c0_17, %c0_18] : memref<4x4x64x128xf32, #tpu.memory_space<vmem>>, vector<1x1x64x128xf32>
    %8 = vector.shape_cast %7 : vector<1x1x64x128xf32> to vector<64x128xf32>
    %cst_19 = arith.constant dense<0.000000e+00> : vector<16x128xf32>
    %9 = tpu.matmul %6, %8, %cst_19 {dimension_numbers = #tpu.dot_dimension_numbers<[1], [0], [0], [1], [0, 0, 1, 1], [], []>} : vector<16x64xf32>, vector<64x128xf32>, vector<16x128xf32> -> vector<16x128xf32>
    %10 = arith.addf %4, %9 : vector<16x128xf32>
    %11 = vector.extract_strided_slice %1 {offsets = [0, 0, 0, 0], sizes = [1, 4, 4, 64], strides = [1, 1, 1, 1]} : vector<1x5x5x64xf32> to vector<1x4x4x64xf32>
    %12 = vector.shape_cast %11 : vector<1x4x4x64xf32> to vector<16x64xf32>
    %c0_20 = arith.constant 0 : index
    %c1 = arith.constant 1 : index
    %c0_21 = arith.constant 0 : index
    %c0_22 = arith.constant 0 : index
    %13 = vector.load %arg5[%c0_20, %c1, %c0_21, %c0_22] : memref<4x4x64x128xf32, #tpu.memory_space<vmem>>, vector<1x1x64x128xf32>
    %14 = vector.shape_cast %13 : vector<1x1x64x128xf32> to vector<64x128xf32>
    %cst_23 = arith.constant dense<0.000000e+00> : vector<16x128xf32>
    %15 = tpu.matmul %12, %14, %cst_23 {dimension_numbers = #tpu.dot_dimension_numbers<[1], [0], [0], [1], [0, 0, 1, 1], [], []>} : vector<16x64xf32>, vector<64x128xf32>, vector<16x128xf32> -> vector<16x128xf32>
    %16 = arith.addf %10, %15 : vector<16x128xf32>
    %17 = vector.extract_strided_slice %2 {offsets = [0, 0, 0, 0], sizes = [1, 4, 4, 64], strides = [1, 1, 1, 1]} : vector<1x5x5x64xf32> to vector<1x4x4x64xf32>
    %18 = vector.shape_cast %17 : vector<1x4x4x64xf32> to vector<16x64xf32>
    %c0_24 = arith.constant 0 : index
    %c2 = arith.constant 2 : index
    %c0_25 = arith.constant 0 : index
    %c0_26 = arith.constant 0 : index
    %19 = vector.load %arg5[%c0_24, %c2, %c0_25, %c0_26] : memref<4x4x64x128xf32, #tpu.memory_space<vmem>>, vector<1x1x64x128xf32>
    %20 = vector.shape_cast %19 : vector<1x1x64x128xf32> to vector<64x128xf32>
    %cst_27 = arith.constant dense<0.000000e+00> : vector<16x128xf32>
    %21 = tpu.matmul %18, %20, %cst_27 {dimension_numbers = #tpu.dot_dimension_numbers<[1], [0], [0], [1], [0, 0, 1, 1], [], []>} : vector<16x64xf32>, vector<64x128xf32>, vector<16x128xf32> -> vector<16x128xf32>
    %22 = arith.addf %16, %21 : vector<16x128xf32>
    %23 = vector.extract_strided_slice %3 {offsets = [0, 0, 0, 0], sizes = [1, 4, 4, 64], strides = [1, 1, 1, 1]} : vector<1x5x5x64xf32> to vector<1x4x4x64xf32>
    %24 = vector.shape_cast %23 : vector<1x4x4x64xf32> to vector<16x64xf32>
    %c0_28 = arith.constant 0 : index
    %c3 = arith.constant 3 : index
    %c0_29 = arith.constant 0 : index
    %c0_30 = arith.constant 0 : index
    %25 = vector.load %arg5[%c0_28, %c3, %c0_29, %c0_30] : memref<4x4x64x128xf32, #tpu.memory_space<vmem>>, vector<1x1x64x128xf32>
    %26 = vector.shape_cast %25 : vector<1x1x64x128xf32> to vector<64x128xf32>
    %cst_31 = arith.constant dense<0.000000e+00> : vector<16x128xf32>
    %27 = tpu.matmul %24, %26, %cst_31 {dimension_numbers = #tpu.dot_dimension_numbers<[1], [0], [0], [1], [0, 0, 1, 1], [], []>} : vector<16x64xf32>, vector<64x128xf32>, vector<16x128xf32> -> vector<16x128xf32>
    %28 = arith.addf %22, %27 : vector<16x128xf32>
    %29 = vector.extract_strided_slice %1 {offsets = [0, 0, 0, 0], sizes = [1, 4, 4, 64], strides = [1, 1, 1, 1]} : vector<1x5x5x64xf32> to vector<1x4x4x64xf32>
    %30 = vector.shape_cast %29 : vector<1x4x4x64xf32> to vector<16x64xf32>
    %c1_32 = arith.constant 1 : index
    %c0_33 = arith.constant 0 : index
    %c0_34 = arith.constant 0 : index
    %c0_35 = arith.constant 0 : index
    %31 = vector.load %arg5[%c1_32, %c0_33, %c0_34, %c0_35] : memref<4x4x64x128xf32, #tpu.memory_space<vmem>>, vector<1x1x64x128xf32>
    %32 = vector.shape_cast %31 : vector<1x1x64x128xf32> to vector<64x128xf32>
    %cst_36 = arith.constant dense<0.000000e+00> : vector<16x128xf32>
    %33 = tpu.matmul %30, %32, %cst_36 {dimension_numbers = #tpu.dot_dimension_numbers<[1], [0], [0], [1], [0, 0, 1, 1], [], []>} : vector<16x64xf32>, vector<64x128xf32>, vector<16x128xf32> -> vector<16x128xf32>
    %34 = arith.addf %28, %33 : vector<16x128xf32>
    %35 = vector.extract_strided_slice %0 {offsets = [0, 0, 1, 0], sizes = [1, 4, 4, 64], strides = [1, 1, 1, 1]} : vector<1x5x5x64xf32> to vector<1x4x4x64xf32>
    %36 = vector.shape_cast %35 : vector<1x4x4x64xf32> to vector<16x64xf32>
    %c1_37 = arith.constant 1 : index
    %c1_38 = arith.constant 1 : index
    %c0_39 = arith.constant 0 : index
    %c0_40 = arith.constant 0 : index
    %37 = vector.load %arg5[%c1_37, %c1_38, %c0_39, %c0_40] : memref<4x4x64x128xf32, #tpu.memory_space<vmem>>, vector<1x1x64x128xf32>
    %38 = vector.shape_cast %37 : vector<1x1x64x128xf32> to vector<64x128xf32>
    %cst_41 = arith.constant dense<0.000000e+00> : vector<16x128xf32>
    %39 = tpu.matmul %36, %38, %cst_41 {dimension_numbers = #tpu.dot_dimension_numbers<[1], [0], [0], [1], [0, 0, 1, 1], [], []>} : vector<16x64xf32>, vector<64x128xf32>, vector<16x128xf32> -> vector<16x128xf32>
    %40 = arith.addf %34, %39 : vector<16x128xf32>
    %41 = vector.extract_strided_slice %3 {offsets = [0, 0, 0, 0], sizes = [1, 4, 4, 64], strides = [1, 1, 1, 1]} : vector<1x5x5x64xf32> to vector<1x4x4x64xf32>
    %42 = vector.shape_cast %41 : vector<1x4x4x64xf32> to vector<16x64xf32>
    %c1_42 = arith.constant 1 : index
    %c2_43 = arith.constant 2 : index
    %c0_44 = arith.constant 0 : index
    %c0_45 = arith.constant 0 : index
    %43 = vector.load %arg5[%c1_42, %c2_43, %c0_44, %c0_45] : memref<4x4x64x128xf32, #tpu.memory_space<vmem>>, vector<1x1x64x128xf32>
    %44 = vector.shape_cast %43 : vector<1x1x64x128xf32> to vector<64x128xf32>
    %cst_46 = arith.constant dense<0.000000e+00> : vector<16x128xf32>
    %45 = tpu.matmul %42, %44, %cst_46 {dimension_numbers = #tpu.dot_dimension_numbers<[1], [0], [0], [1], [0, 0, 1, 1], [], []>} : vector<16x64xf32>, vector<64x128xf32>, vector<16x128xf32> -> vector<16x128xf32>
    %46 = arith.addf %40, %45 : vector<16x128xf32>
    %47 = vector.extract_strided_slice %2 {offsets = [0, 0, 1, 0], sizes = [1, 4, 4, 64], strides = [1, 1, 1, 1]} : vector<1x5x5x64xf32> to vector<1x4x4x64xf32>
    %48 = vector.shape_cast %47 : vector<1x4x4x64xf32> to vector<16x64xf32>
    %c1_47 = arith.constant 1 : index
    %c3_48 = arith.constant 3 : index
    %c0_49 = arith.constant 0 : index
    %c0_50 = arith.constant 0 : index
    %49 = vector.load %arg5[%c1_47, %c3_48, %c0_49, %c0_50] : memref<4x4x64x128xf32, #tpu.memory_space<vmem>>, vector<1x1x64x128xf32>
    %50 = vector.shape_cast %49 : vector<1x1x64x128xf32> to vector<64x128xf32>
    %cst_51 = arith.constant dense<0.000000e+00> : vector<16x128xf32>
    %51 = tpu.matmul %48, %50, %cst_51 {dimension_numbers = #tpu.dot_dimension_numbers<[1], [0], [0], [1], [0, 0, 1, 1], [], []>} : vector<16x64xf32>, vector<64x128xf32>, vector<16x128xf32> -> vector<16x128xf32>
    %52 = arith.addf %46, %51 : vector<16x128xf32>
    %53 = vector.extract_strided_slice %2 {offsets = [0, 0, 0, 0], sizes = [1, 4, 4, 64], strides = [1, 1, 1, 1]} : vector<1x5x5x64xf32> to vector<1x4x4x64xf32>
    %54 = vector.shape_cast %53 : vector<1x4x4x64xf32> to vector<16x64xf32>
    %c2_52 = arith.constant 2 : index
    %c0_53 = arith.constant 0 : index
    %c0_54 = arith.constant 0 : index
    %c0_55 = arith.constant 0 : index
    %55 = vector.load %arg5[%c2_52, %c0_53, %c0_54, %c0_55] : memref<4x4x64x128xf32, #tpu.memory_space<vmem>>, vector<1x1x64x128xf32>
    %56 = vector.shape_cast %55 : vector<1x1x64x128xf32> to vector<64x128xf32>
    %cst_56 = arith.constant dense<0.000000e+00> : vector<16x128xf32>
    %57 = tpu.matmul %54, %56, %cst_56 {dimension_numbers = #tpu.dot_dimension_numbers<[1], [0], [0], [1], [0, 0, 1, 1], [], []>} : vector<16x64xf32>, vector<64x128xf32>, vector<16x128xf32> -> vector<16x128xf32>
    %58 = arith.addf %52, %57 : vector<16x128xf32>
    %59 = vector.extract_strided_slice %3 {offsets = [0, 0, 0, 0], sizes = [1, 4, 4, 64], strides = [1, 1, 1, 1]} : vector<1x5x5x64xf32> to vector<1x4x4x64xf32>
    %60 = vector.shape_cast %59 : vector<1x4x4x64xf32> to vector<16x64xf32>
    %c2_57 = arith.constant 2 : index
    %c1_58 = arith.constant 1 : index
    %c0_59 = arith.constant 0 : index
    %c0_60 = arith.constant 0 : index
    %61 = vector.load %arg5[%c2_57, %c1_58, %c0_59, %c0_60] : memref<4x4x64x128xf32, #tpu.memory_space<vmem>>, vector<1x1x64x128xf32>
    %62 = vector.shape_cast %61 : vector<1x1x64x128xf32> to vector<64x128xf32>
    %cst_61 = arith.constant dense<0.000000e+00> : vector<16x128xf32>
    %63 = tpu.matmul %60, %62, %cst_61 {dimension_numbers = #tpu.dot_dimension_numbers<[1], [0], [0], [1], [0, 0, 1, 1], [], []>} : vector<16x64xf32>, vector<64x128xf32>, vector<16x128xf32> -> vector<16x128xf32>
    %64 = arith.addf %58, %63 : vector<16x128xf32>
    %65 = vector.extract_strided_slice %0 {offsets = [0, 1, 0, 0], sizes = [1, 4, 4, 64], strides = [1, 1, 1, 1]} : vector<1x5x5x64xf32> to vector<1x4x4x64xf32>
    %66 = vector.shape_cast %65 : vector<1x4x4x64xf32> to vector<16x64xf32>
    %c2_62 = arith.constant 2 : index
    %c2_63 = arith.constant 2 : index
    %c0_64 = arith.constant 0 : index
    %c0_65 = arith.constant 0 : index
    %67 = vector.load %arg5[%c2_62, %c2_63, %c0_64, %c0_65] : memref<4x4x64x128xf32, #tpu.memory_space<vmem>>, vector<1x1x64x128xf32>
    %68 = vector.shape_cast %67 : vector<1x1x64x128xf32> to vector<64x128xf32>
    %cst_66 = arith.constant dense<0.000000e+00> : vector<16x128xf32>
    %69 = tpu.matmul %66, %68, %cst_66 {dimension_numbers = #tpu.dot_dimension_numbers<[1], [0], [0], [1], [0, 0, 1, 1], [], []>} : vector<16x64xf32>, vector<64x128xf32>, vector<16x128xf32> -> vector<16x128xf32>
    %70 = arith.addf %64, %69 : vector<16x128xf32>
    %71 = vector.extract_strided_slice %1 {offsets = [0, 1, 0, 0], sizes = [1, 4, 4, 64], strides = [1, 1, 1, 1]} : vector<1x5x5x64xf32> to vector<1x4x4x64xf32>
    %72 = vector.shape_cast %71 : vector<1x4x4x64xf32> to vector<16x64xf32>
    %c2_67 = arith.constant 2 : index
    %c3_68 = arith.constant 3 : index
    %c0_69 = arith.constant 0 : index
    %c0_70 = arith.constant 0 : index
    %73 = vector.load %arg5[%c2_67, %c3_68, %c0_69, %c0_70] : memref<4x4x64x128xf32, #tpu.memory_space<vmem>>, vector<1x1x64x128xf32>
    %74 = vector.shape_cast %73 : vector<1x1x64x128xf32> to vector<64x128xf32>
    %cst_71 = arith.constant dense<0.000000e+00> : vector<16x128xf32>
    %75 = tpu.matmul %72, %74, %cst_71 {dimension_numbers = #tpu.dot_dimension_numbers<[1], [0], [0], [1], [0, 0, 1, 1], [], []>} : vector<16x64xf32>, vector<64x128xf32>, vector<16x128xf32> -> vector<16x128xf32>
    %76 = arith.addf %70, %75 : vector<16x128xf32>
    %77 = vector.extract_strided_slice %3 {offsets = [0, 0, 0, 0], sizes = [1, 4, 4, 64], strides = [1, 1, 1, 1]} : vector<1x5x5x64xf32> to vector<1x4x4x64xf32>
    %78 = vector.shape_cast %77 : vector<1x4x4x64xf32> to vector<16x64xf32>
    %c3_72 = arith.constant 3 : index
    %c0_73 = arith.constant 0 : index
    %c0_74 = arith.constant 0 : index
    %c0_75 = arith.constant 0 : index
    %79 = vector.load %arg5[%c3_72, %c0_73, %c0_74, %c0_75] : memref<4x4x64x128xf32, #tpu.memory_space<vmem>>, vector<1x1x64x128xf32>
    %80 = vector.shape_cast %79 : vector<1x1x64x128xf32> to vector<64x128xf32>
    %cst_76 = arith.constant dense<0.000000e+00> : vector<16x128xf32>
    %81 = tpu.matmul %78, %80, %cst_76 {dimension_numbers = #tpu.dot_dimension_numbers<[1], [0], [0], [1], [0, 0, 1, 1], [], []>} : vector<16x64xf32>, vector<64x128xf32>, vector<16x128xf32> -> vector<16x128xf32>
    %82 = arith.addf %76, %81 : vector<16x128xf32>
    %83 = vector.extract_strided_slice %2 {offsets = [0, 0, 1, 0], sizes = [1, 4, 4, 64], strides = [1, 1, 1, 1]} : vector<1x5x5x64xf32> to vector<1x4x4x64xf32>
    %84 = vector.shape_cast %83 : vector<1x4x4x64xf32> to vector<16x64xf32>
    %c3_77 = arith.constant 3 : index
    %c1_78 = arith.constant 1 : index
    %c0_79 = arith.constant 0 : index
    %c0_80 = arith.constant 0 : index
    %85 = vector.load %arg5[%c3_77, %c1_78, %c0_79, %c0_80] : memref<4x4x64x128xf32, #tpu.memory_space<vmem>>, vector<1x1x64x128xf32>
    %86 = vector.shape_cast %85 : vector<1x1x64x128xf32> to vector<64x128xf32>
    %cst_81 = arith.constant dense<0.000000e+00> : vector<16x128xf32>
    %87 = tpu.matmul %84, %86, %cst_81 {dimension_numbers = #tpu.dot_dimension_numbers<[1], [0], [0], [1], [0, 0, 1, 1], [], []>} : vector<16x64xf32>, vector<64x128xf32>, vector<16x128xf32> -> vector<16x128xf32>
    %88 = arith.addf %82, %87 : vector<16x128xf32>
    %89 = vector.extract_strided_slice %1 {offsets = [0, 1, 0, 0], sizes = [1, 4, 4, 64], strides = [1, 1, 1, 1]} : vector<1x5x5x64xf32> to vector<1x4x4x64xf32>
    %90 = vector.shape_cast %89 : vector<1x4x4x64xf32> to vector<16x64xf32>
    %c3_82 = arith.constant 3 : index
    %c2_83 = arith.constant 2 : index
    %c0_84 = arith.constant 0 : index
    %c0_85 = arith.constant 0 : index
    %91 = vector.load %arg5[%c3_82, %c2_83, %c0_84, %c0_85] : memref<4x4x64x128xf32, #tpu.memory_space<vmem>>, vector<1x1x64x128xf32>
    %92 = vector.shape_cast %91 : vector<1x1x64x128xf32> to vector<64x128xf32>
    %cst_86 = arith.constant dense<0.000000e+00> : vector<16x128xf32>
    %93 = tpu.matmul %90, %92, %cst_86 {dimension_numbers = #tpu.dot_dimension_numbers<[1], [0], [0], [1], [0, 0, 1, 1], [], []>} : vector<16x64xf32>, vector<64x128xf32>, vector<16x128xf32> -> vector<16x128xf32>
    %94 = arith.addf %88, %93 : vector<16x128xf32>
    %95 = vector.extract_strided_slice %0 {offsets = [0, 1, 1, 0], sizes = [1, 4, 4, 64], strides = [1, 1, 1, 1]} : vector<1x5x5x64xf32> to vector<1x4x4x64xf32>
    %96 = vector.shape_cast %95 : vector<1x4x4x64xf32> to vector<16x64xf32>
    %c3_87 = arith.constant 3 : index
    %c3_88 = arith.constant 3 : index
    %c0_89 = arith.constant 0 : index
    %c0_90 = arith.constant 0 : index
    %97 = vector.load %arg5[%c3_87, %c3_88, %c0_89, %c0_90] : memref<4x4x64x128xf32, #tpu.memory_space<vmem>>, vector<1x1x64x128xf32>
    %98 = vector.shape_cast %97 : vector<1x1x64x128xf32> to vector<64x128xf32>
    %cst_91 = arith.constant dense<0.000000e+00> : vector<16x128xf32>
    %99 = tpu.matmul %96, %98, %cst_91 {dimension_numbers = #tpu.dot_dimension_numbers<[1], [0], [0], [1], [0, 0, 1, 1], [], []>} : vector<16x64xf32>, vector<64x128xf32>, vector<16x128xf32> -> vector<16x128xf32>
    %100 = arith.addf %94, %99 : vector<16x128xf32>
    %c0_92 = arith.constant 0 : index
    %c0_93 = arith.constant 0 : index
    %101 = vector.load %arg6[%c0_92, %c0_93] : memref<1x128xf32, #tpu.memory_space<vmem>>, vector<1x128xf32>
    %102 = vector.broadcast %101 : vector<1x128xf32> to vector<16x128xf32>
    %103 = arith.addf %100, %102 : vector<16x128xf32>
    %cst_94 = arith.constant 0.000000e+00 : f32
    %104 = vector.broadcast %cst_94 : f32 to vector<16x128xf32>
    %105 = arith.maximumf %103, %104 : vector<16x128xf32>
    %106 = vector.shape_cast %105 : vector<16x128xf32> to vector<1x4x4x128xf32>
    %cst_95 = arith.constant 0.000000e+00 : f32
    %107 = vector.broadcast %cst_95 : f32 to vector<9x64xf32>
    %108 = vector.extract_strided_slice %106 {offsets = [0, 0, 0, 0], sizes = [1, 3, 3, 128], strides = [1, 1, 1, 1]} : vector<1x4x4x128xf32> to vector<1x3x3x128xf32>
    %109 = vector.shape_cast %108 : vector<1x3x3x128xf32> to vector<9x128xf32>
    %c0_96 = arith.constant 0 : index
    %c0_97 = arith.constant 0 : index
    %c0_98 = arith.constant 0 : index
    %c0_99 = arith.constant 0 : index
    %110 = vector.load %arg7[%c0_96, %c0_97, %c0_98, %c0_99] : memref<2x2x128x64xf32, #tpu.memory_space<vmem>>, vector<1x1x128x64xf32>
    %111 = vector.shape_cast %110 : vector<1x1x128x64xf32> to vector<128x64xf32>
    %cst_100 = arith.constant dense<0.000000e+00> : vector<9x64xf32>
    %112 = tpu.matmul %109, %111, %cst_100 {dimension_numbers = #tpu.dot_dimension_numbers<[1], [0], [0], [1], [0, 0, 1, 1], [], []>} : vector<9x128xf32>, vector<128x64xf32>, vector<9x64xf32> -> vector<9x64xf32>
    %113 = arith.addf %107, %112 : vector<9x64xf32>
    %114 = vector.extract_strided_slice %106 {offsets = [0, 0, 1, 0], sizes = [1, 3, 3, 128], strides = [1, 1, 1, 1]} : vector<1x4x4x128xf32> to vector<1x3x3x128xf32>
    %115 = vector.shape_cast %114 : vector<1x3x3x128xf32> to vector<9x128xf32>
    %c0_101 = arith.constant 0 : index
    %c1_102 = arith.constant 1 : index
    %c0_103 = arith.constant 0 : index
    %c0_104 = arith.constant 0 : index
    %116 = vector.load %arg7[%c0_101, %c1_102, %c0_103, %c0_104] : memref<2x2x128x64xf32, #tpu.memory_space<vmem>>, vector<1x1x128x64xf32>
    %117 = vector.shape_cast %116 : vector<1x1x128x64xf32> to vector<128x64xf32>
    %cst_105 = arith.constant dense<0.000000e+00> : vector<9x64xf32>
    %118 = tpu.matmul %115, %117, %cst_105 {dimension_numbers = #tpu.dot_dimension_numbers<[1], [0], [0], [1], [0, 0, 1, 1], [], []>} : vector<9x128xf32>, vector<128x64xf32>, vector<9x64xf32> -> vector<9x64xf32>
    %119 = arith.addf %113, %118 : vector<9x64xf32>
    %120 = vector.extract_strided_slice %106 {offsets = [0, 1, 0, 0], sizes = [1, 3, 3, 128], strides = [1, 1, 1, 1]} : vector<1x4x4x128xf32> to vector<1x3x3x128xf32>
    %121 = vector.shape_cast %120 : vector<1x3x3x128xf32> to vector<9x128xf32>
    %c1_106 = arith.constant 1 : index
    %c0_107 = arith.constant 0 : index
    %c0_108 = arith.constant 0 : index
    %c0_109 = arith.constant 0 : index
    %122 = vector.load %arg7[%c1_106, %c0_107, %c0_108, %c0_109] : memref<2x2x128x64xf32, #tpu.memory_space<vmem>>, vector<1x1x128x64xf32>
    %123 = vector.shape_cast %122 : vector<1x1x128x64xf32> to vector<128x64xf32>
    %cst_110 = arith.constant dense<0.000000e+00> : vector<9x64xf32>
    %124 = tpu.matmul %121, %123, %cst_110 {dimension_numbers = #tpu.dot_dimension_numbers<[1], [0], [0], [1], [0, 0, 1, 1], [], []>} : vector<9x128xf32>, vector<128x64xf32>, vector<9x64xf32> -> vector<9x64xf32>
    %125 = arith.addf %119, %124 : vector<9x64xf32>
    %126 = vector.extract_strided_slice %106 {offsets = [0, 1, 1, 0], sizes = [1, 3, 3, 128], strides = [1, 1, 1, 1]} : vector<1x4x4x128xf32> to vector<1x3x3x128xf32>
    %127 = vector.shape_cast %126 : vector<1x3x3x128xf32> to vector<9x128xf32>
    %c1_111 = arith.constant 1 : index
    %c1_112 = arith.constant 1 : index
    %c0_113 = arith.constant 0 : index
    %c0_114 = arith.constant 0 : index
    %128 = vector.load %arg7[%c1_111, %c1_112, %c0_113, %c0_114] : memref<2x2x128x64xf32, #tpu.memory_space<vmem>>, vector<1x1x128x64xf32>
    %129 = vector.shape_cast %128 : vector<1x1x128x64xf32> to vector<128x64xf32>
    %cst_115 = arith.constant dense<0.000000e+00> : vector<9x64xf32>
    %130 = tpu.matmul %127, %129, %cst_115 {dimension_numbers = #tpu.dot_dimension_numbers<[1], [0], [0], [1], [0, 0, 1, 1], [], []>} : vector<9x128xf32>, vector<128x64xf32>, vector<9x64xf32> -> vector<9x64xf32>
    %131 = arith.addf %125, %130 : vector<9x64xf32>
    %c0_116 = arith.constant 0 : index
    %c0_117 = arith.constant 0 : index
    %132 = vector.load %arg8[%c0_116, %c0_117] : memref<1x64xf32, #tpu.memory_space<vmem>>, vector<1x64xf32>
    %133 = vector.broadcast %132 : vector<1x64xf32> to vector<9x64xf32>
    %134 = arith.addf %131, %133 : vector<9x64xf32>
    %cst_118 = arith.constant 0.000000e+00 : f32
    %135 = vector.broadcast %cst_118 : f32 to vector<9x64xf32>
    %136 = arith.maximumf %134, %135 : vector<9x64xf32>
    %137 = vector.shape_cast %136 : vector<9x64xf32> to vector<1x3x3x64xf32>
    %cst_119 = arith.constant 0.000000e+00 : f32
    %138 = vector.broadcast %cst_119 : f32 to vector<1x64xf32>
    %139 = vector.extract_strided_slice %137 {offsets = [0, 0, 0, 0], sizes = [1, 1, 1, 64], strides = [1, 1, 1, 1]} : vector<1x3x3x64xf32> to vector<1x1x1x64xf32>
    %140 = vector.shape_cast %139 : vector<1x1x1x64xf32> to vector<1x64xf32>
    %c0_120 = arith.constant 0 : index
    %c0_121 = arith.constant 0 : index
    %c0_122 = arith.constant 0 : index
    %c0_123 = arith.constant 0 : index
    %141 = vector.load %arg9[%c0_120, %c0_121, %c0_122, %c0_123] : memref<3x3x64x64xf32, #tpu.memory_space<vmem>>, vector<1x1x64x64xf32>
    %142 = vector.shape_cast %141 : vector<1x1x64x64xf32> to vector<64x64xf32>
    %cst_124 = arith.constant dense<0.000000e+00> : vector<1x64xf32>
    %143 = tpu.matmul %140, %142, %cst_124 {dimension_numbers = #tpu.dot_dimension_numbers<[1], [0], [0], [1], [0, 0, 1, 1], [], []>} : vector<1x64xf32>, vector<64x64xf32>, vector<1x64xf32> -> vector<1x64xf32>
    %144 = arith.addf %138, %143 : vector<1x64xf32>
    %145 = vector.extract_strided_slice %137 {offsets = [0, 0, 1, 0], sizes = [1, 1, 1, 64], strides = [1, 1, 1, 1]} : vector<1x3x3x64xf32> to vector<1x1x1x64xf32>
    %146 = vector.shape_cast %145 : vector<1x1x1x64xf32> to vector<1x64xf32>
    %c0_125 = arith.constant 0 : index
    %c1_126 = arith.constant 1 : index
    %c0_127 = arith.constant 0 : index
    %c0_128 = arith.constant 0 : index
    %147 = vector.load %arg9[%c0_125, %c1_126, %c0_127, %c0_128] : memref<3x3x64x64xf32, #tpu.memory_space<vmem>>, vector<1x1x64x64xf32>
    %148 = vector.shape_cast %147 : vector<1x1x64x64xf32> to vector<64x64xf32>
    %cst_129 = arith.constant dense<0.000000e+00> : vector<1x64xf32>
    %149 = tpu.matmul %146, %148, %cst_129 {dimension_numbers = #tpu.dot_dimension_numbers<[1], [0], [0], [1], [0, 0, 1, 1], [], []>} : vector<1x64xf32>, vector<64x64xf32>, vector<1x64xf32> -> vector<1x64xf32>
    %150 = arith.addf %144, %149 : vector<1x64xf32>
    %151 = vector.extract_strided_slice %137 {offsets = [0, 0, 2, 0], sizes = [1, 1, 1, 64], strides = [1, 1, 1, 1]} : vector<1x3x3x64xf32> to vector<1x1x1x64xf32>
    %152 = vector.shape_cast %151 : vector<1x1x1x64xf32> to vector<1x64xf32>
    %c0_130 = arith.constant 0 : index
    %c2_131 = arith.constant 2 : index
    %c0_132 = arith.constant 0 : index
    %c0_133 = arith.constant 0 : index
    %153 = vector.load %arg9[%c0_130, %c2_131, %c0_132, %c0_133] : memref<3x3x64x64xf32, #tpu.memory_space<vmem>>, vector<1x1x64x64xf32>
    %154 = vector.shape_cast %153 : vector<1x1x64x64xf32> to vector<64x64xf32>
    %cst_134 = arith.constant dense<0.000000e+00> : vector<1x64xf32>
    %155 = tpu.matmul %152, %154, %cst_134 {dimension_numbers = #tpu.dot_dimension_numbers<[1], [0], [0], [1], [0, 0, 1, 1], [], []>} : vector<1x64xf32>, vector<64x64xf32>, vector<1x64xf32> -> vector<1x64xf32>
    %156 = arith.addf %150, %155 : vector<1x64xf32>
    %157 = vector.extract_strided_slice %137 {offsets = [0, 1, 0, 0], sizes = [1, 1, 1, 64], strides = [1, 1, 1, 1]} : vector<1x3x3x64xf32> to vector<1x1x1x64xf32>
    %158 = vector.shape_cast %157 : vector<1x1x1x64xf32> to vector<1x64xf32>
    %c1_135 = arith.constant 1 : index
    %c0_136 = arith.constant 0 : index
    %c0_137 = arith.constant 0 : index
    %c0_138 = arith.constant 0 : index
    %159 = vector.load %arg9[%c1_135, %c0_136, %c0_137, %c0_138] : memref<3x3x64x64xf32, #tpu.memory_space<vmem>>, vector<1x1x64x64xf32>
    %160 = vector.shape_cast %159 : vector<1x1x64x64xf32> to vector<64x64xf32>
    %cst_139 = arith.constant dense<0.000000e+00> : vector<1x64xf32>
    %161 = tpu.matmul %158, %160, %cst_139 {dimension_numbers = #tpu.dot_dimension_numbers<[1], [0], [0], [1], [0, 0, 1, 1], [], []>} : vector<1x64xf32>, vector<64x64xf32>, vector<1x64xf32> -> vector<1x64xf32>
    %162 = arith.addf %156, %161 : vector<1x64xf32>
    %163 = vector.extract_strided_slice %137 {offsets = [0, 1, 1, 0], sizes = [1, 1, 1, 64], strides = [1, 1, 1, 1]} : vector<1x3x3x64xf32> to vector<1x1x1x64xf32>
    %164 = vector.shape_cast %163 : vector<1x1x1x64xf32> to vector<1x64xf32>
    %c1_140 = arith.constant 1 : index
    %c1_141 = arith.constant 1 : index
    %c0_142 = arith.constant 0 : index
    %c0_143 = arith.constant 0 : index
    %165 = vector.load %arg9[%c1_140, %c1_141, %c0_142, %c0_143] : memref<3x3x64x64xf32, #tpu.memory_space<vmem>>, vector<1x1x64x64xf32>
    %166 = vector.shape_cast %165 : vector<1x1x64x64xf32> to vector<64x64xf32>
    %cst_144 = arith.constant dense<0.000000e+00> : vector<1x64xf32>
    %167 = tpu.matmul %164, %166, %cst_144 {dimension_numbers = #tpu.dot_dimension_numbers<[1], [0], [0], [1], [0, 0, 1, 1], [], []>} : vector<1x64xf32>, vector<64x64xf32>, vector<1x64xf32> -> vector<1x64xf32>
    %168 = arith.addf %162, %167 : vector<1x64xf32>
    %169 = vector.extract_strided_slice %137 {offsets = [0, 1, 2, 0], sizes = [1, 1, 1, 64], strides = [1, 1, 1, 1]} : vector<1x3x3x64xf32> to vector<1x1x1x64xf32>
    %170 = vector.shape_cast %169 : vector<1x1x1x64xf32> to vector<1x64xf32>
    %c1_145 = arith.constant 1 : index
    %c2_146 = arith.constant 2 : index
    %c0_147 = arith.constant 0 : index
    %c0_148 = arith.constant 0 : index
    %171 = vector.load %arg9[%c1_145, %c2_146, %c0_147, %c0_148] : memref<3x3x64x64xf32, #tpu.memory_space<vmem>>, vector<1x1x64x64xf32>
    %172 = vector.shape_cast %171 : vector<1x1x64x64xf32> to vector<64x64xf32>
    %cst_149 = arith.constant dense<0.000000e+00> : vector<1x64xf32>
    %173 = tpu.matmul %170, %172, %cst_149 {dimension_numbers = #tpu.dot_dimension_numbers<[1], [0], [0], [1], [0, 0, 1, 1], [], []>} : vector<1x64xf32>, vector<64x64xf32>, vector<1x64xf32> -> vector<1x64xf32>
    %174 = arith.addf %168, %173 : vector<1x64xf32>
    %175 = vector.extract_strided_slice %137 {offsets = [0, 2, 0, 0], sizes = [1, 1, 1, 64], strides = [1, 1, 1, 1]} : vector<1x3x3x64xf32> to vector<1x1x1x64xf32>
    %176 = vector.shape_cast %175 : vector<1x1x1x64xf32> to vector<1x64xf32>
    %c2_150 = arith.constant 2 : index
    %c0_151 = arith.constant 0 : index
    %c0_152 = arith.constant 0 : index
    %c0_153 = arith.constant 0 : index
    %177 = vector.load %arg9[%c2_150, %c0_151, %c0_152, %c0_153] : memref<3x3x64x64xf32, #tpu.memory_space<vmem>>, vector<1x1x64x64xf32>
    %178 = vector.shape_cast %177 : vector<1x1x64x64xf32> to vector<64x64xf32>
    %cst_154 = arith.constant dense<0.000000e+00> : vector<1x64xf32>
    %179 = tpu.matmul %176, %178, %cst_154 {dimension_numbers = #tpu.dot_dimension_numbers<[1], [0], [0], [1], [0, 0, 1, 1], [], []>} : vector<1x64xf32>, vector<64x64xf32>, vector<1x64xf32> -> vector<1x64xf32>
    %180 = arith.addf %174, %179 : vector<1x64xf32>
    %181 = vector.extract_strided_slice %137 {offsets = [0, 2, 1, 0], sizes = [1, 1, 1, 64], strides = [1, 1, 1, 1]} : vector<1x3x3x64xf32> to vector<1x1x1x64xf32>
    %182 = vector.shape_cast %181 : vector<1x1x1x64xf32> to vector<1x64xf32>
    %c2_155 = arith.constant 2 : index
    %c1_156 = arith.constant 1 : index
    %c0_157 = arith.constant 0 : index
    %c0_158 = arith.constant 0 : index
    %183 = vector.load %arg9[%c2_155, %c1_156, %c0_157, %c0_158] : memref<3x3x64x64xf32, #tpu.memory_space<vmem>>, vector<1x1x64x64xf32>
    %184 = vector.shape_cast %183 : vector<1x1x64x64xf32> to vector<64x64xf32>
    %cst_159 = arith.constant dense<0.000000e+00> : vector<1x64xf32>
    %185 = tpu.matmul %182, %184, %cst_159 {dimension_numbers = #tpu.dot_dimension_numbers<[1], [0], [0], [1], [0, 0, 1, 1], [], []>} : vector<1x64xf32>, vector<64x64xf32>, vector<1x64xf32> -> vector<1x64xf32>
    %186 = arith.addf %180, %185 : vector<1x64xf32>
    %187 = vector.extract_strided_slice %137 {offsets = [0, 2, 2, 0], sizes = [1, 1, 1, 64], strides = [1, 1, 1, 1]} : vector<1x3x3x64xf32> to vector<1x1x1x64xf32>
    %188 = vector.shape_cast %187 : vector<1x1x1x64xf32> to vector<1x64xf32>
    %c2_160 = arith.constant 2 : index
    %c2_161 = arith.constant 2 : index
    %c0_162 = arith.constant 0 : index
    %c0_163 = arith.constant 0 : index
    %189 = vector.load %arg9[%c2_160, %c2_161, %c0_162, %c0_163] : memref<3x3x64x64xf32, #tpu.memory_space<vmem>>, vector<1x1x64x64xf32>
    %190 = vector.shape_cast %189 : vector<1x1x64x64xf32> to vector<64x64xf32>
    %cst_164 = arith.constant dense<0.000000e+00> : vector<1x64xf32>
    %191 = tpu.matmul %188, %190, %cst_164 {dimension_numbers = #tpu.dot_dimension_numbers<[1], [0], [0], [1], [0, 0, 1, 1], [], []>} : vector<1x64xf32>, vector<64x64xf32>, vector<1x64xf32> -> vector<1x64xf32>
    %192 = arith.addf %186, %191 : vector<1x64xf32>
    %c0_165 = arith.constant 0 : index
    %c0_166 = arith.constant 0 : index
    %193 = vector.load %arg10[%c0_165, %c0_166] : memref<1x64xf32, #tpu.memory_space<vmem>>, vector<1x64xf32>
    %194 = arith.addf %192, %193 : vector<1x64xf32>
    %cst_167 = arith.constant 0.000000e+00 : f32
    %195 = vector.broadcast %cst_167 : f32 to vector<1x64xf32>
    %196 = arith.maximumf %194, %195 : vector<1x64xf32>
    %197 = vector.shape_cast %196 : vector<1x64xf32> to vector<1x1x64xf32>
    %c0_168 = arith.constant 0 : index
    %c0_169 = arith.constant 0 : index
    %c0_170 = arith.constant 0 : index
    %198 = vector.load %arg11[%c0_168, %c0_169, %c0_170] : memref<1x1x64xf32, #tpu.memory_space<vmem>>, vector<1x1x64xf32>
    tpu.vector_store %arg11[%c0_168, %c0_169, %c0_170], %197 {strides = array<i32>} : memref<1x1x64xf32, #tpu.memory_space<vmem>>, vector<1x1x64xf32>,
    return
  }
  func.func @transform_0(%arg0: i32) -> (i32, i32, i32, i32) {
    %c0_i32 = arith.constant 0 : i32
    %c0_i32_0 = arith.constant 0 : i32
    %c0_i32_1 = arith.constant 0 : i32
    %c0_i32_2 = arith.constant 0 : i32
    return %arg0, %c0_i32, %c0_i32_0, %c0_i32_1 : i32, i32, i32, i32
  }
  func.func @transform_1(%arg0: i32) -> (i32, i32, i32, i32) {
    %c0_i32 = arith.constant 0 : i32
    %c0_i32_0 = arith.constant 0 : i32
    %c0_i32_1 = arith.constant 0 : i32
    %c0_i32_2 = arith.constant 0 : i32
    return %arg0, %c0_i32, %c0_i32_0, %c0_i32_1 : i32, i32, i32, i32
  }
  func.func @transform_2(%arg0: i32) -> (i32, i32, i32, i32) {
    %c0_i32 = arith.constant 0 : i32
    %c0_i32_0 = arith.constant 0 : i32
    %c0_i32_1 = arith.constant 0 : i32
    %c0_i32_2 = arith.constant 0 : i32
    return %arg0, %c0_i32, %c0_i32_0, %c0_i32_1 : i32, i32, i32, i32
  }
  func.func @transform_3(%arg0: i32) -> (i32, i32, i32, i32) {
    %c0_i32 = arith.constant 0 : i32
    %c0_i32_0 = arith.constant 0 : i32
    %c0_i32_1 = arith.constant 0 : i32
    %c0_i32_2 = arith.constant 0 : i32
    return %arg0, %c0_i32, %c0_i32_0, %c0_i32_1 : i32, i32, i32, i32
  }
  func.func @transform_4(%arg0: i32) -> (i32, i32, i32, i32) {
    %c0_i32 = arith.constant 0 : i32
    %c0_i32_0 = arith.constant 0 : i32
    %c0_i32_1 = arith.constant 0 : i32
    %c0_i32_2 = arith.constant 0 : i32
    %c0_i32_3 = arith.constant 0 : i32
    return %c0_i32, %c0_i32_0, %c0_i32_1, %c0_i32_2 : i32, i32, i32, i32
  }
  func.func @transform_5(%arg0: i32) -> (i32, i32) {
    %c0_i32 = arith.constant 0 : i32
    %c0_i32_0 = arith.constant 0 : i32
    %c0_i32_1 = arith.constant 0 : i32
    return %c0_i32, %c0_i32_0 : i32, i32
  }
  func.func @transform_6(%arg0: i32) -> (i32, i32, i32, i32) {
    %c0_i32 = arith.constant 0 : i32
    %c0_i32_0 = arith.constant 0 : i32
    %c0_i32_1 = arith.constant 0 : i32
    %c0_i32_2 = arith.constant 0 : i32
    %c0_i32_3 = arith.constant 0 : i32
    return %c0_i32, %c0_i32_0, %c0_i32_1, %c0_i32_2 : i32, i32, i32, i32
  }
  func.func @transform_7(%arg0: i32) -> (i32, i32) {
    %c0_i32 = arith.constant 0 : i32
    %c0_i32_0 = arith.constant 0 : i32
    %c0_i32_1 = arith.constant 0 : i32
    return %c0_i32, %c0_i32_0 : i32, i32
  }
  func.func @transform_8(%arg0: i32) -> (i32, i32, i32, i32) {
    %c0_i32 = arith.constant 0 : i32
    %c0_i32_0 = arith.constant 0 : i32
    %c0_i32_1 = arith.constant 0 : i32
    %c0_i32_2 = arith.constant 0 : i32
    %c0_i32_3 = arith.constant 0 : i32
    return %c0_i32, %c0_i32_0, %c0_i32_1, %c0_i32_2 : i32, i32, i32, i32
  }
  func.func @transform_9(%arg0: i32) -> (i32, i32) {
    %c0_i32 = arith.constant 0 : i32
    %c0_i32_0 = arith.constant 0 : i32
    %c0_i32_1 = arith.constant 0 : i32
    return %c0_i32, %c0_i32_0 : i32, i32
  }
  func.func @transform_10(%arg0: i32) -> (i32, i32, i32) {
    %c0_i32 = arith.constant 0 : i32
    %c0_i32_0 = arith.constant 0 : i32
    %c0_i32_1 = arith.constant 0 : i32
    return %arg0, %c0_i32, %c0_i32_0 : i32, i32, i32
  }
}

</mosaic_0001>

<bundles_post_ra>
// kernel: cnn_forward.3
= control target key start
LH: loop header
LB: loop body
LE: loop exit
PB: predicated region body
PF: predicated region fallthrough
CT: control target
= control target key end

     0   :  { %s479_s0 = inlined_call_operand.vmem [shape: f32[2,64], index: 0, kind: input, shape index: {}]   ;;  %s480_s1 = inlined_call_operand.vmem [shape: f32[64,128], index: 1, kind: input, shape index: {}]   ;;  %s481_s2 = inlined_call_operand.vmem [shape: f32[1,128], index: 2, kind: input, shape index: {}]   ;;  %s482_s3 = inlined_call_operand.vmem [shape: f32[128,128], index: 3, kind: input, shape index: {}]   ;;  %s483_s4 = inlined_call_operand.vmem [shape: f32[1,128], index: 4, kind: input, shape index: {}]   ;;  %s484_s5 = inlined_call_operand.vmem [shape: f32[128,128], index: 5, kind: input, shape index: {}]   ;;  %s485_s6 = inlined_call_operand.vmem [shape: f32[1,128], index: 6, kind: input, shape index: {}]   ;;  %s486_s7 = inlined_call_operand.vmem [shape: f32[128,128], index: 7, kind: input, shape index: {}]   ;;  %s487_s8 = inlined_call_operand.vmem [shape: f32[1,128], index: 8, kind: input, shape index: {}]   ;;  %s488_s9 = inlined_call_operand.hbm [shape: f32[2,128], index: 9, kind: output, shape index: {}]  }
   0x1   :  { %v41_v0 = vld [vmem:[%s480_s1 + $0x38] sm:$0xff]  ;;  %v40_v1 = vld [vmem:[%s480_s1 + $0x30] sm:$0xff]  ;;  %v39_v2 = vld [vmem:[%s480_s1 + $0x28] sm:$0xff] }
   0x2   :  { %58 = vmatpush.msra.mxu0 %v41_v0  ;;  %v86_v3 = vld [vmem:[%s482_s3 + $0x78] sm:$0xff]  ;;  %v85_v4 = vld [vmem:[%s482_s3 + $0x70] sm:$0xff]  ;;  %v38_v5 = vld [vmem:[%s480_s1 + $0x20] sm:$0xff] }
   0x3   :  { %91 = vmatpush.msra.mxu1 %v86_v3  ;;  %v84_v6 = vld [vmem:[%s482_s3 + $0x68] sm:$0xff]  ;;  %v37_v7 = vld [vmem:[%s480_s1 + $0x18] sm:$0xff]  ;;  %v36_v8 = vld [vmem:[%s480_s1 + $0x10] sm:$0xff] }
   0x4   :  { %59 = vmatpush.msra.mxu0 %v40_v1  ;;  %v83_v9 = vld [vmem:[%s482_s3 + $0x60] sm:$0xff]  ;;  %v82_v10 = vld [vmem:[%s482_s3 + $0x58] sm:$0xff] }
   0x5   :  { %92 = vmatpush.msra.mxu1 %v85_v4 }
   0x6   :  { %60 = vmatpush.msra.mxu0 %v39_v2 }
   0x7   :  { %93 = vmatpush.msra.mxu1 %v84_v6 }
   0x8   :  { %61 = vmatpush.msra.mxu0 %v38_v5 }
   0xa   :  { %62 = vmatpush.msra.mxu0 %v37_v7 }
   0xb   :  { %14 = vsyncpa [#allocation3], 0  ;;  %v35_v11 = vld [vmem:[%s480_s1 + $0x8] sm:$0xff]  ;;  %94 = vmatpush.msra.mxu1 %v83_v9  ;;  %v81_v12 = vld [vmem:[%s482_s3 + $0x50] sm:$0xff]  ;;  %vm46_vm0 = vcmask 523264   ;;  %s242_s10 = smov [#allocation2]  }
   0xc   :  { %63 = vmatpush.msra.mxu0 %v36_v8  ;;  %v34_v13 = vld [vmem:[%s480_s1] sm:$0xff]  ;;  %v80_v15 = vld [vmem:[%s482_s3 + $0x48] sm:$0xff]  ;;  %v78_v17 = vld [vmem:[%s482_s3 + $0x38] sm:$0xff]  ;;  %s199_s11 = sshll.u32 %s242_s10, 4  ;;  %s201_s14 = sshll.u32 %s488_s9, 4  ;;  %s200_s11 = int_to_ptr.vmem [resolvable:$true] %s199_s11  ;;  %s202_s14 = int_to_ptr.hbm [resolvable:$true] %s201_s14 }
   0xd   :  { %95 = vmatpush.msra.mxu1 %v82_v10  ;;  %v33_v14 = vld [vmem:[%s479_s0] sm:$0x3]  ;;  %v77_v18 = vld [vmem:[%s482_s3 + $0x30] sm:$0xff]  ;;  %v76_v19 = vld [vmem:[%s482_s3 + $0x28] sm:$0xff] }
   0xe   :  { %64 = vmatpush.msra.mxu0 %v35_v11  ;;  %v79_v16 = vld [vmem:[%s482_s3 + $0x40] sm:$0xff]  ;;  %v74_v21 = vld [vmem:[%s482_s3 + $0x18] sm:$0xff]  ;;  %v73_v22 = vld [vmem:[%s482_s3 + $0x10] sm:$0xff] }
   0xf   :  { %96 = vmatpush.msra.mxu1 %v81_v12  ;;  %v75_v20 = vld [vmem:[%s482_s3 + $0x20] sm:$0xff]  ;;  %v72_v23 = vld [vmem:[%s482_s3 + $0x8] sm:$0xff]  ;;  %v127_v25 = vld [vmem:[%s484_s5 + $0x78] sm:$0xff] }
  0x10   :  { %65 = vmatpush.msra.mxu0 %v34_v13  ;;  %v71_v24 = vld [vmem:[%s482_s3] sm:$0xff]  ;;  %v126_v26 = vld [vmem:[%s484_s5 + $0x70] sm:$0xff]  ;;  %132 = vmatpush.msra.mxu2 %v127_v25  ;;  %v125_v27 = vld [vmem:[%s484_s5 + $0x68] sm:$0xff] }
  0x11   :  { %210 = vmatmul.msk.f32.vlgmr.msra.gmra.mxu0 %vm46_vm0, %v33_v14  ;;  %97 = vmatpush.msra.mxu1 %v80_v15  ;;  %v124_v28 = vld [vmem:[%s484_s5 + $0x60] sm:$0xff]  ;;  %v123_v29 = vld [vmem:[%s484_s5 + $0x58] sm:$0xff]  ;;  %v122_v30 = vld [vmem:[%s484_s5 + $0x50] sm:$0xff] }
  0x12   :  { %133 = vmatpush.msra.mxu2 %v126_v26  ;;  %v121_v31 = vld [vmem:[%s484_s5 + $0x48] sm:$0xff]  ;;  %v120_v32 = vld [vmem:[%s484_s5 + $0x40] sm:$0xff]  ;;  %v119_v33 = vld [vmem:[%s484_s5 + $0x38] sm:$0xff] }
  0x13   :  { %98 = vmatpush.msra.mxu1 %v79_v16  ;;  %v118_v34 = vld [vmem:[%s484_s5 + $0x30] sm:$0xff]  ;;  %v117_v35 = vld [vmem:[%s484_s5 + $0x28] sm:$0xff]  ;;  %v116_v36 = vld [vmem:[%s484_s5 + $0x20] sm:$0xff] }
  0x14   :  { %134 = vmatpush.msra.mxu2 %v125_v27  ;;  %v115_v37 = vld [vmem:[%s484_s5 + $0x18] sm:$0xff]  ;;  %v212_v38 = vld [vmem:[%s481_s2] ss:$0 sm:$0xff]  ;;  %v114_v42 = vld [vmem:[%s484_s5 + $0x10] sm:$0xff] }
  0x15   :  { %99 = vmatpush.msra.mxu1 %v78_v17  ;;  %v113_v43 = vld [vmem:[%s484_s5 + $0x8] sm:$0xff]  ;;  %v112_v44 = vld [vmem:[%s484_s5] sm:$0xff]  ;;  %v168_v45 = vld [vmem:[%s486_s7 + $0x78] sm:$0xff] }
  0x16   :  { %135 = vmatpush.msra.mxu2 %v124_v28  ;;  %v167_v46 = vld [vmem:[%s486_s7 + $0x70] sm:$0xff]  ;;  %173 = vmatpush.msra.mxu3 %v168_v45  ;;  %v166_v47 = vld [vmem:[%s486_s7 + $0x68] sm:$0xff]  ;;  %v165_v48 = vld [vmem:[%s486_s7 + $0x60] sm:$0xff] }
  0x17   :  { %100 = vmatpush.msra.mxu1 %v77_v18  ;;  %v164_v49 = vld [vmem:[%s486_s7 + $0x58] sm:$0xff]  ;;  %v163_v50 = vld [vmem:[%s486_s7 + $0x50] sm:$0xff]  ;;  %v162_v51 = vld [vmem:[%s486_s7 + $0x48] sm:$0xff] }
  0x18   :  { %136 = vmatpush.msra.mxu2 %v123_v29  ;;  %174 = vmatpush.msra.mxu3 %v167_v46  ;;  %v161_v52 = vld [vmem:[%s486_s7 + $0x40] sm:$0xff]  ;;  %v160_v53 = vld [vmem:[%s486_s7 + $0x38] sm:$0xff]  ;;  %v159_v54 = vld [vmem:[%s486_s7 + $0x30] sm:$0xff] }
  0x19   :  { %101 = vmatpush.msra.mxu1 %v76_v19  ;;  %v158_v55 = vld [vmem:[%s486_s7 + $0x28] sm:$0xff]  ;;  %v157_v56 = vld [vmem:[%s486_s7 + $0x20] sm:$0xff]  ;;  %v156_v57 = vld [vmem:[%s486_s7 + $0x18] sm:$0xff] }
  0x1a   :  { %137 = vmatpush.msra.mxu2 %v122_v30  ;;  %175 = vmatpush.msra.mxu3 %v166_v47  ;;  %v213_v58 = vld [vmem:[%s483_s4] ss:$0 sm:$0xff]  ;;  %v155_v62 = vld [vmem:[%s486_s7 + $0x10] sm:$0xff]  ;;  %v154_v63 = vld [vmem:[%s486_s7 + $0x8] sm:$0xff] }
  0x1b   :  { %102 = vmatpush.msra.mxu1 %v75_v20  ;;  %v153_v0 = vld [vmem:[%s486_s7] sm:$0xff] }
  0x1c   :  { %138 = vmatpush.msra.mxu2 %v121_v31  ;;  %176 = vmatpush.msra.mxu3 %v165_v48  ;;  %v214_v1 = vld [vmem:[%s485_s6] ss:$0 sm:$0xff] }
  0x1d   :  { %103 = vmatpush.msra.mxu1 %v74_v21  ;;  %v215_v5 = vld [vmem:[%s487_s8] ss:$0 sm:$0xff] }
  0x1e   :  { %139 = vmatpush.msra.mxu2 %v120_v32  ;;  %177 = vmatpush.msra.mxu3 %v164_v49 }
  0x1f   :  { %104 = vmatpush.msra.mxu1 %v73_v22 }
  0x20   :  { %140 = vmatpush.msra.mxu2 %v119_v33  ;;  %178 = vmatpush.msra.mxu3 %v163_v50 }
  0x21   :  { %105 = vmatpush.msra.mxu1 %v72_v23 }
  0x22   :  { %141 = vmatpush.msra.mxu2 %v118_v34  ;;  %179 = vmatpush.msra.mxu3 %v162_v51 }
  0x23   :  { %106 = vmatpush.msra.mxu1 %v71_v24 }
  0x24   :  { %142 = vmatpush.msra.mxu2 %v117_v35  ;;  %180 = vmatpush.msra.mxu3 %v161_v52 }
  0x26   :  { %143 = vmatpush.msra.mxu2 %v116_v36  ;;  %181 = vmatpush.msra.mxu3 %v160_v53 }
  0x28   :  { %144 = vmatpush.msra.mxu2 %v115_v37  ;;  %182 = vmatpush.msra.mxu3 %v159_v54 }
  0x2a   :  { %145 = vmatpush.msra.mxu2 %v114_v42  ;;  %183 = vmatpush.msra.mxu3 %v158_v55 }
  0x2c   :  { %146 = vmatpush.msra.mxu2 %v113_v43  ;;  %184 = vmatpush.msra.mxu3 %v157_v56 }
  0x2e   :  { %147 = vmatpush.msra.mxu2 %v112_v44  ;;  %185 = vmatpush.msra.mxu3 %v156_v57 }
  0x30   :  { %186 = vmatpush.msra.mxu3 %v155_v62 }
  0x32   :  { %187 = vmatpush.msra.mxu3 %v154_v63 }
  0x34   :  { %188 = vmatpush.msra.mxu3 %v153_v0 }
  0x8e   :  { %v67_v39 = vpop.f32.mrf.mxu0 }
  0x8f   :  { %v68_v40 = vadd.f32 %v212_v38, %v67_v39 }
  0x91   :  { %v70_v41 = vmax.f32 %v68_v40, 0.0 }
  0x93   :  { %107 = vmatmul.f32.vlgmr.msra.gmra.mxu1 %v70_v41 }
 0x110   :  { %v108_v59 = vpop.f32.mrf.mxu1 }
 0x111   :  { %v109_v60 = vadd.f32 %v213_v58, %v108_v59 }
 0x113   :  { %v111_v61 = vmax.f32 %v109_v60, 0.0 }
 0x115   :  { %148 = vmatmul.f32.vlgmr.msra.gmra.mxu2 %v111_v61 }
 0x198   :  { %v149_v2 = vpop.f32.mrf.mxu2 }
 0x199   :  { %v150_v3 = vadd.f32 %v214_v1, %v149_v2 }
 0x19b   :  { %v152_v4 = vmax.f32 %v150_v3, 0.0 }
 0x19d   :  { %189 = vmatmul.f32.vlgmr.msra.gmra.mxu3 %v152_v4 }
 0x220   :  { %v190_v6 = vpop.f32.mrf.mxu3 }
 0x221   :  { %v191_v7 = vadd.f32 %v215_v5, %v190_v6 }
 0x223   :  { %193 = vst [vmem:[#allocation2] sm:$0x3] %v191_v7 }
 0x224   :  { %204 = dma.vmem_to_hbm [thread:$0]  %s200_s11, 32, %s202_s14, [#allocation3]  }
 0x225   :  { %240 = dma.done.wait [#allocation3], 32  }
 0x226   :  { %241 = vsyncadd [#allocation3], 4294967264 }
 0x227   :  { %209 = vsyncpa [#allocation3], 1 }

// kernel: cnn_forward.2
= control target key start
LH: loop header
LB: loop body
LE: loop exit
PB: predicated region body
PF: predicated region fallthrough
CT: control target
= control target key end

     0   :  { %s2332_s13 = smov 0   ;;  %s3378_s0 = inlined_call_operand.vmem [shape: f32[2,5,5,64], index: 0, kind: input, shape index: {}]   ;;  %s3379_s1 = inlined_call_operand.vmem [shape: f32[2,5,5,64], index: 1, kind: input, shape index: {}]   ;;  %s3380_s2 = inlined_call_operand.vmem [shape: f32[2,5,5,64], index: 2, kind: input, shape index: {}]   ;;  %s3381_s3 = inlined_call_operand.vmem [shape: f32[2,5,5,64], index: 3, kind: input, shape index: {}]   ;;  %s3382_s4 = inlined_call_operand.vmem [shape: f32[4,4,64,128], index: 4, kind: input, shape index: {}]   ;;  %s3383_s5 = inlined_call_operand.vmem [shape: f32[1,128], index: 5, kind: input, shape index: {}]   ;;  %s3384_s6 = inlined_call_operand.vmem [shape: f32[2,2,128,64], index: 6, kind: input, shape index: {}]   ;;  %s3385_s7 = inlined_call_operand.vmem [shape: f32[1,64], index: 7, kind: input, shape index: {}]   ;;  %s3386_s8 = inlined_call_operand.vmem [shape: f32[3,3,64,64], index: 8, kind: input, shape index: {}]   ;;  %s3387_s9 = inlined_call_operand.vmem [shape: f32[1,64], index: 9, kind: input, shape index: {}]   ;;  %s3388_s10 = inlined_call_operand.vmem [shape: f32[2,1,64], index: 10, kind: output, shape index: {}]  }
   0x1 LB: > { %s1956_s14 = sadd.s32 4294967295, %s2275_s13   ;;  %p1960_p0 = scmp.ge.s32.totalorder %s2275_s13, 1  ;;  %s2275_s13 = sphi %s2332_s13, %s20_s13  }
   0x2   : > { %p342_p1 = scmp.lt.s32.totalorder %s2275_s13, 3 }
   0x4   : > { %p343_p2 = pnand %p1960_p0, %p342_p1 }
   0x5   : > { %p393_p3 = scmp.lt.s32.totalorder (!%p343_p2), %s1956_s14, 1 }
   0x6   : > { %346 = sbr.rel (%p343_p2) target bundleno = 707 (0x2c3), region = 60 }
   0xb   : > { %v1972_v0 = vld [vmem:[%s3382_s4 + $0x78] sm:$0xff]  ;;  %v1971_v1 = vld [vmem:[%s3382_s4 + $0x70] sm:$0xff]  ;;  %v1970_v4 = vld [vmem:[%s3382_s4 + $0x68] sm:$0xff]  ;;  %s3390_s14 = smov (!%p393_p3, %s1956_s14), 1  ;;  %vm464_vm0 = vcmask 523264   ;;  %vm1265_vm1 = vcmask 1041409  }
   0xc   : > { %477 = vmatpush.msra.mxu0 %v1972_v0  ;;  %v1984_v2 = vld [vmem:[%s3382_s4 + $0xb8] sm:$0xff]  ;;  %v1983_v3 = vld [vmem:[%s3382_s4 + $0xb0] sm:$0xff]  ;;  %v1982_v6 = vld [vmem:[%s3382_s4 + $0xa8] sm:$0xff]  ;;  %s2376_s19 = smul.u32 40, %s3390_s14  ;;  %vm1268_vm2 = vcmask 1042434   ;;  %vm1263_vm3 = vcmask 1040384   ;;  %s415_s15 = scalar_lea.vmem %s3388_s10, %s3390_s14 }
   0xd   : > { %566 = vmatpush.msra.mxu2 %v1984_v2  ;;  %v441_v5 = vld [vmem:[%s3382_s4 + $0x38] sm:$0xff]  ;;  %v440_v8 = vld [vmem:[%s3382_s4 + $0x30] sm:$0xff]  ;;  %v1969_v9 = vld [vmem:[%s3382_s4 + $0x60] sm:$0xff]  ;;  %vm1871_vm4 = vcmask 516096  }
   0xe   : > { %478 = vmatpush.msra.mxu0 %v1971_v1  ;;  %517 = vmatpush.msra.mxu1 %v441_v5  ;;  %v1994_v7 = vld [vmem:[%s3382_s4 + $0xf8] sm:$0xff]  ;;  %v1993_v10 = vld [vmem:[%s3382_s4 + $0xf0] sm:$0xff]  ;;  %v1981_v11 = vld [vmem:[%s3382_s4 + $0xa0] sm:$0xff]  ;;  %s2400_s16 = scalar_lea.vmem %s3379_s1, %s2376_s19  ;;  %s2452_s24 = scalar_lea.vmem %s3378_s0, %s2376_s19 }
   0xf   : > { %567 = vmatpush.msra.mxu2 %v1983_v3  ;;  %617 = vmatpush.msra.mxu3 %v1994_v7  ;;  %v439_v12 = vld [vmem:[%s3382_s4 + $0x28] sm:$0xff]  ;;  %v1968_v14 = vld [vmem:[%s3382_s4 + $0x58] sm:$0xff]  ;;  %v438_v16 = vld [vmem:[%s3382_s4 + $0x20] sm:$0xff]  ;;  %s407_s17 = scalar_lea.vmem %s3380_s2, %s2376_s19  ;;  %s412_s21 = scalar_lea.vmem %s3381_s3, %s2376_s19 }
  0x10   : > { %479 = vmatpush.msra.mxu0 %v1970_v4  ;;  %518 = vmatpush.msra.mxu1 %v440_v8  ;;  %v1992_v13 = vld [vmem:[%s3382_s4 + $0xe8] sm:$0xff]  ;;  %v1980_v15 = vld [vmem:[%s3382_s4 + $0x98] sm:$0xff]  ;;  %v1991_v17 = vld [vmem:[%s3382_s4 + $0xe0] sm:$0xff] }
  0x11   : > { %568 = vmatpush.msra.mxu2 %v1982_v6  ;;  %618 = vmatpush.msra.mxu3 %v1993_v10  ;;  %v2406_v18 = vld [vmem:[%s2400_s16] sm:$0x1f]  ;;  %v2409_v19 = vld [vmem:[%s2400_s16 + $0x8] sm:$0x1f]  ;;  %v1967_v20 = vld [vmem:[%s3382_s4 + $0x50] sm:$0xff] }
  0x12   : > { %480 = vmatpush.msra.mxu0 %v1969_v9  ;;  %519 = vmatpush.msra.mxu1 %v439_v12  ;;  %v1979_v21 = vld [vmem:[%s3382_s4 + $0x90] sm:$0xff]  ;;  %v2421_v23 = vld [vmem:[%s2400_s16 + $0x18] sm:$0x1f]  ;;  %455 = vst [vmem:[#allocation1] ss:$2 sm:$0xff] %v2406_v18  ;;  %v1966_v26 = vld [vmem:[%s3382_s4 + $0x48] sm:$0xff] }
  0x13   : > { %569 = vmatpush.msra.mxu2 %v1981_v11  ;;  %619 = vmatpush.msra.mxu3 %v1992_v13  ;;  %v2418_v22 = vld [vmem:[%s2400_s16 + $0x10] sm:$0x1f]  ;;  %v437_v24 = vld [vmem:[%s3382_s4 + $0x18] sm:$0xff]  ;;  %457 = vst [vmem:[#allocation1 + $0x1] ss:$2 sm:$0xff] %v2409_v19  ;;  %v1978_v28 = vld [vmem:[%s3382_s4 + $0x88] sm:$0xff] }
  0x14   : > { %481 = vmatpush.msra.mxu0 %v1968_v14  ;;  %520 = vmatpush.msra.mxu1 %v438_v16  ;;  %v1990_v25 = vld [vmem:[%s3382_s4 + $0xd8] sm:$0xff]  ;;  %v436_v27 = vld [vmem:[%s3382_s4 + $0x10] sm:$0xff]  ;;  %459 = vst [vmem:[#allocation1 + $0x10] ss:$2 sm:$0xff] %v2418_v22  ;;  %v1965_v30 = vld [vmem:[%s3382_s4 + $0x40] sm:$0xff] }
  0x15   : > { %570 = vmatpush.msra.mxu2 %v1980_v15  ;;  %620 = vmatpush.msra.mxu3 %v1991_v17  ;;  %v1989_v29 = vld [vmem:[%s3382_s4 + $0xd0] sm:$0xff]  ;;  %461 = vst [vmem:[#allocation1 + $0x11] ss:$2 sm:$0xff] %v2421_v23  ;;  %v2004_v31 = vld [vmem:[%s3382_s4 + $0x138] sm:$0xff]  ;;  %v1977_v32 = vld [vmem:[%s3382_s4 + $0x80] sm:$0xff] }
  0x16   : > { %482 = vmatpush.msra.mxu0 %v1967_v20  ;;  %521 = vmatpush.msra.mxu1 %v437_v24  ;;  %v435_v33 = vld [vmem:[%s3382_s4 + $0x8] sm:$0xff]  ;;  %v2032_v35 = vld [vmem:[%s3382_s4 + $0x1b8] sm:$0xff]  ;;  %v2470_v36 = vld [vmem:[%s2452_s24] sm:$0x1f] }
  0x17   : > { %571 = vmatpush.msra.mxu2 %v1979_v21  ;;  %621 = vmatpush.msra.mxu3 %v1990_v25  ;;  %v1988_v34 = vld [vmem:[%s3382_s4 + $0xc8] sm:$0xff]  ;;  %v434_v37 = vld [vmem:[%s3382_s4] sm:$0xff]  ;;  %v2003_v38 = vld [vmem:[%s3382_s4 + $0x130] sm:$0xff]  ;;  %v2007_v1 = vrot.slane %v2470_v36, 9 }
  0x18   : > { %483 = vmatpush.msra.mxu0 %v1966_v26  ;;  %522 = vmatpush.msra.mxu1 %v436_v27  ;;  %v2479_v39 = vld [vmem:[%s2452_s24 + $0x8] sm:$0x1f]  ;;  %v1987_v40 = vld [vmem:[%s3382_s4 + $0xc0] sm:$0xff]  ;;  %v2031_v43 = vld [vmem:[%s3382_s4 + $0x1b0] sm:$0xff] }
  0x19   : > { %572 = vmatpush.msra.mxu2 %v1978_v28  ;;  %622 = vmatpush.msra.mxu3 %v1989_v29  ;;  %v2002_v42 = vld [vmem:[%s3382_s4 + $0x128] sm:$0xff]  ;;  %v2493_v44 = vld [vmem:[%s2452_s24 + $0x10] sm:$0x1f]  ;;  %v2496_v45 = vld [vmem:[%s2452_s24 + $0x18] sm:$0x1f]  ;;  %v2009_v3 = vrot.slane %v2479_v39, 9 }
  0x1a   : > { %484 = vmatpush.msra.mxu0 %v1965_v30  ;;  %523 = vmatpush.msra.mxu1 %v435_v33  ;;  %v462_v41 = vld.sshfl [vmem:[#allocation1] sm:$0xff pattern:$0x75316420]  ;;  %v2510_v49 = vld [vmem:[%s407_s17 + $0x8] sm:$0x1f]  ;;  %v2000_v62 = vld [vmem:[%s3382_s4 + $0x118] sm:$0xff] }
  0x1b   : > { %573 = vmatpush.msra.mxu2 %v1977_v32  ;;  %623 = vmatpush.msra.mxu3 %v1988_v34  ;;  %496 = vst [vmem:[#allocation1] ss:$2 sm:$0xff] %v2470_v36  ;;  %v2001_v47 = vld [vmem:[%s3382_s4 + $0x120] sm:$0xff]  ;;  %v2515_v51 = vld [vmem:[%s407_s17 + $0x10] sm:$0x1f]  ;;  %v2022_v63 = vld [vmem:[%s3382_s4 + $0x178] sm:$0xff] }
  0x1c   : > { %664 = vmatpush.msrb.mxu0 %v2004_v31  ;;  %524 = vmatpush.msra.mxu1 %v434_v37  ;;  %v463_v46 = vld.sshfl [vmem:[#allocation1 + $0x10] sm:$0xff pattern:$0x75316420]  ;;  %498 = vst [vmem:[#allocation1 + $0x1] ss:$2 sm:$0xff] %v2479_v39  ;;  %v2030_v0 = vld [vmem:[%s3382_s4 + $0x1a8] sm:$0xff] }
  0x1d   : > { %781 = vmatpush.msrb.mxu2 %v2032_v35  ;;  %1973 = vmatmul.msk.f32.vlgmr.msra.gmra.mxu0 %vm464_vm0, %v462_v41  ;;  %500 = vst [vmem:[#allocation1 + $0x10] ss:$2 sm:$0xff] %v2493_v44  ;;  %v2508_v48 = vld [vmem:[%s407_s17] sm:$0x1f]  ;;  %v2518_v52 = vld [vmem:[%s407_s17 + $0x18] sm:$0x1f] }
  0x1e   : > { %665 = vmatpush.msrb.mxu0 %v2003_v38  ;;  %624 = vmatpush.msra.mxu3 %v1987_v40  ;;  %502 = vst [vmem:[#allocation1 + $0x11] ss:$2 sm:$0xff] %v2496_v45  ;;  %v2526_v54 = vld [vmem:[%s412_s21] sm:$0x1f]  ;;  %v2528_v55 = vld [vmem:[%s412_s21 + $0x8] sm:$0x1f] }
  0x1f   : > { %782 = vmatpush.msrb.mxu2 %v2031_v43  ;;  %v2532_v57 = vld [vmem:[%s412_s21 + $0x10] sm:$0x1f]  ;;  %v2535_v58 = vld [vmem:[%s412_s21 + $0x18] sm:$0x1f]  ;;  %734 = vmatpush.msrb.mxu1 %v2022_v63  ;;  %v2029_v6 = vld [vmem:[%s3382_s4 + $0x1a0] sm:$0xff]  ;;  %v2011_v7 = vrot.slane %v2493_v44, 9 }
  0x20   : > { %666 = vmatpush.msrb.mxu0 %v2002_v42  ;;  %v2050_v2 = vld [vmem:[%s3382_s4 + $0x1f8] sm:$0xff]  ;;  %v1999_v4 = vld [vmem:[%s3382_s4 + $0x110] sm:$0xff]  ;;  %v2013_v10 = vrot.slane %v2496_v45, 9  ;;  %v1998_v11 = vld [vmem:[%s3382_s4 + $0x108] sm:$0xff]  ;;  %v2039_v63 = vrot.slane %v2515_v51, 9 }
  0x21   : > { %783 = vmatpush.msrb.mxu2 %v2030_v0  ;;  %848 = vmatpush.msrb.mxu3 %v2050_v2  ;;  %v2021_v5 = vld [vmem:[%s3382_s4 + $0x170] sm:$0xff]  ;;  %v2020_v12 = vld [vmem:[%s3382_s4 + $0x168] sm:$0xff]  ;;  %v2028_v13 = vld [vmem:[%s3382_s4 + $0x198] sm:$0xff] }
  0x22   : > { %667 = vmatpush.msrb.mxu0 %v2001_v47  ;;  %735 = vmatpush.msrb.mxu1 %v2021_v5  ;;  %v2049_v8 = vld [vmem:[%s3382_s4 + $0x1f0] sm:$0xff]  ;;  %v2048_v14 = vld [vmem:[%s3382_s4 + $0x1e8] sm:$0xff]  ;;  %v1997_v16 = vld [vmem:[%s3382_s4 + $0x100] sm:$0xff] }
  0x23   : > { %v503_v50 = vld.sshfl [vmem:[#allocation1] sm:$0xff pattern:$0x75316420]  ;;  %784 = vmatpush.msrb.mxu2 %v2029_v6  ;;  %849 = vmatpush.msrb.mxu3 %v2049_v8  ;;  %v2018_v21 = vld [vmem:[%s3382_s4 + $0x158] sm:$0xff]  ;;  %v2026_v24 = vld [vmem:[%s3382_s4 + $0x188] sm:$0xff] }
  0x24   : > { %545 = vst [vmem:[#allocation1] ss:$2 sm:$0xff] %v2508_v48  ;;  %1975 = vmatmul.msk.f32.vlgmr.msra.gmra.mxu1 %vm464_vm0, %v503_v50  ;;  %668 = vmatpush.msrb.mxu0 %v2000_v62  ;;  %v2019_v17 = vld [vmem:[%s3382_s4 + $0x160] sm:$0xff]  ;;  %v2046_v25 = vld [vmem:[%s3382_s4 + $0x1d8] sm:$0xff]  ;;  %v2017_v27 = vld [vmem:[%s3382_s4 + $0x150] sm:$0xff]  ;;  %v2035_v50 = vrot.slane %v2508_v48, 9 }
  0x25   : > { %1974 = vmatmul.msk.f32.gmra.mxu0 %vm464_vm0, %v463_v46  ;;  %547 = vst [vmem:[#allocation1 + $0x1] ss:$2 sm:$0xff] %v2510_v49  ;;  %v504_v53 = vld.sshfl [vmem:[#allocation1 + $0x10] sm:$0xff pattern:$0x75316420]  ;;  %736 = vmatpush.msrb.mxu1 %v2020_v12  ;;  %v2047_v20 = vld [vmem:[%s3382_s4 + $0x1e0] sm:$0xff] }
  0x26   : > { %549 = vst [vmem:[#allocation1 + $0x10] ss:$2 sm:$0xff] %v2515_v51  ;;  %669 = vmatpush.msrb.mxu0 %v1999_v4  ;;  %785 = vmatpush.msrb.mxu2 %v2028_v13  ;;  %v2060_v26 = vld [vmem:[%s3382_s4 + $0x238] sm:$0xff]  ;;  %v2025_v28 = vld [vmem:[%s3382_s4 + $0x180] sm:$0xff]  ;;  %v2045_v29 = vld [vmem:[%s3382_s4 + $0x1d0] sm:$0xff]  ;;  %v2041_v4 = vrot.slane %v2518_v52, 9 }
  0x27   : > { %551 = vst [vmem:[#allocation1 + $0x11] ss:$2 sm:$0xff] %v2518_v52  ;;  %850 = vmatpush.msrb.mxu3 %v2048_v14  ;;  %737 = vmatpush.msrb.mxu1 %v2019_v17  ;;  %v2059_v30 = vld [vmem:[%s3382_s4 + $0x230] sm:$0xff]  ;;  %v2016_v32 = vld [vmem:[%s3382_s4 + $0x148] sm:$0xff]  ;;  %v2080_v35 = vld [vmem:[%s3382_s4 + $0x2b8] sm:$0xff] }
  0x28   : > { %670 = vmatpush.msrb.mxu0 %v1998_v11  ;;  %v2044_v33 = vld [vmem:[%s3382_s4 + $0x1c8] sm:$0xff]  ;;  %v2015_v36 = vld [vmem:[%s3382_s4 + $0x140] sm:$0xff]  ;;  %v2079_v41 = vld [vmem:[%s3382_s4 + $0x2b0] sm:$0xff] }
  0x29   : > { %851 = vmatpush.msrb.mxu3 %v2047_v20  ;;  %738 = vmatpush.msrb.mxu1 %v2018_v21  ;;  %v2058_v34 = vld [vmem:[%s3382_s4 + $0x228] sm:$0xff]  ;;  %v2043_v37 = vld [vmem:[%s3382_s4 + $0x1c0] sm:$0xff]  ;;  %v2056_v42 = vld [vmem:[%s3382_s4 + $0x218] sm:$0xff] }
  0x2a   : > { %671 = vmatpush.msrb.mxu0 %v1997_v16  ;;  %v2057_v38 = vld [vmem:[%s3382_s4 + $0x220] sm:$0xff]  ;;  %v2070_v43 = vld [vmem:[%s3382_s4 + $0x278] sm:$0xff]  ;;  %v2078_v46 = vld [vmem:[%s3382_s4 + $0x2a8] sm:$0xff] }
  0x2b   : > { %852 = vmatpush.msrb.mxu3 %v2046_v25  ;;  %739 = vmatpush.msrb.mxu1 %v2017_v27  ;;  %v2090_v47 = vld [vmem:[%s3382_s4 + $0x2f8] sm:$0xff]  ;;  %v2054_v62 = vld [vmem:[%s3382_s4 + $0x208] sm:$0xff]  ;;  %v2053_v6 = vld [vmem:[%s3382_s4 + $0x200] sm:$0xff] }
  0x2c   : > { %v552_v56 = vld.sshfl [vmem:[#allocation1] sm:$0xff pattern:$0x75316420]  ;;  %1976 = vmatmul.msk.f32.gmra.mxu1 %vm464_vm0, %v504_v53  ;;  %895 = vmatpush.msra.mxu0 %v2060_v26  ;;  %v2055_v53 = vld [vmem:[%s3382_s4 + $0x210] sm:$0xff]  ;;  %v2088_v2 = vld [vmem:[%s3382_s4 + $0x2e8] sm:$0xff] }
  0x2d   : > { %1985 = vmatmul.msk.f32.vlgmr.msra.gmra.mxu2 %vm464_vm0, %v552_v56  ;;  %596 = vst [vmem:[#allocation1] ss:$2 sm:$0xff] %v2526_v54  ;;  %853 = vmatpush.msrb.mxu3 %v2045_v29  ;;  %v2069_v56 = vld [vmem:[%s3382_s4 + $0x270] sm:$0xff]  ;;  %v2076_v5 = vld [vmem:[%s3382_s4 + $0x298] sm:$0xff]  ;;  %v2067_v8 = vld [vmem:[%s3382_s4 + $0x260] sm:$0xff] }
  0x2e   : > { %598 = vst [vmem:[#allocation1 + $0x1] ss:$2 sm:$0xff] %v2528_v55  ;;  %v553_v59 = vld.sshfl [vmem:[#allocation1 + $0x10] sm:$0xff pattern:$0x75316420]  ;;  %896 = vmatpush.msra.mxu0 %v2059_v30  ;;  %740 = vmatpush.msrb.mxu1 %v2016_v32  ;;  %v2066_v13 = vld [vmem:[%s3382_s4 + $0x258] sm:$0xff] }
  0x2f   : > { %600 = vst [vmem:[#allocation1 + $0x10] ss:$2 sm:$0xff] %v2532_v57  ;;  %854 = vmatpush.msrb.mxu3 %v2044_v33  ;;  %v2075_v12 = vld [vmem:[%s3382_s4 + $0x290] sm:$0xff]  ;;  %v2086_v14 = vld [vmem:[%s3382_s4 + $0x2d8] sm:$0xff]  ;;  %v2064_v25 = vld [vmem:[%s3382_s4 + $0x248] sm:$0xff] }
  0x30   : > { %602 = vst [vmem:[#allocation1 + $0x11] ss:$2 sm:$0xff] %v2535_v58  ;;  %897 = vmatpush.msra.mxu0 %v2058_v34  ;;  %741 = vmatpush.msrb.mxu1 %v2015_v36  ;;  %v2100_v16 = vld [vmem:[%s3382_s4 + $0x338] sm:$0xff]  ;;  %v2065_v17 = vld [vmem:[%s3382_s4 + $0x250] sm:$0xff]  ;;  %v2084_v26 = vld [vmem:[%s3382_s4 + $0x2c8] sm:$0xff] }
  0x31   : > { %855 = vmatpush.msrb.mxu3 %v2043_v37  ;;  %v2085_v20 = vld [vmem:[%s3382_s4 + $0x2d0] sm:$0xff]  ;;  %v2098_v27 = vld [vmem:[%s3382_s4 + $0x328] sm:$0xff]  ;;  %v2063_v29 = vld [vmem:[%s3382_s4 + $0x240] sm:$0xff] }
  0x32   : > { %898 = vmatpush.msra.mxu0 %v2057_v38  ;;  %942 = vmatpush.msra.mxu1 %v2070_v43  ;;  %v2099_v21 = vld [vmem:[%s3382_s4 + $0x330] sm:$0xff]  ;;  %v2083_v30 = vld [vmem:[%s3382_s4 + $0x2c0] sm:$0xff]  ;;  %v2096_v32 = vld [vmem:[%s3382_s4 + $0x318] sm:$0xff] }
  0x33   : > { %v2110_v33 = vld [vmem:[%s3382_s4 + $0x378] sm:$0xff]  ;;  %v2095_v34 = vld [vmem:[%s3382_s4 + $0x310] sm:$0xff]  ;;  %v2094_v37 = vld [vmem:[%s3382_s4 + $0x308] sm:$0xff] }
  0x34   : > { %899 = vmatpush.msra.mxu0 %v2056_v42  ;;  %943 = vmatpush.msra.mxu1 %v2069_v56  ;;  %v2108_v38 = vld [vmem:[%s3382_s4 + $0x368] sm:$0xff]  ;;  %v2107_v42 = vld [vmem:[%s3382_s4 + $0x360] sm:$0xff]  ;;  %v2106_v43 = vld [vmem:[%s3382_s4 + $0x358] sm:$0xff] }
  0x35   : > { %v603_v60 = vld.sshfl [vmem:[#allocation1] sm:$0xff pattern:$0x75316420]  ;;  %1986 = vmatmul.msk.f32.gmra.mxu2 %vm464_vm0, %v553_v59  ;;  %v2037_v59 = vrot.slane %v2510_v49, 9 }
  0x36   : > { %1995 = vmatmul.msk.f32.vlgmr.msra.gmra.mxu3 %vm464_vm0, %v603_v60  ;;  %643 = vst [vmem:[#allocation1] ss:$2 sm:$0xff] %v2406_v18  ;;  %v2027_v18 = vld [vmem:[%s3382_s4 + $0x190] sm:$0xff]  ;;  %900 = vmatpush.msra.mxu0 %v2055_v53 }
  0x37   : > { %645 = vst [vmem:[#allocation1 + $0x1] ss:$2 sm:$0xff] %v2409_v19  ;;  %v604_v61 = vld.sshfl [vmem:[#allocation1 + $0x10] sm:$0xff pattern:$0x75316420]  ;;  %786 = vmatpush.msrb.mxu2 %v2027_v18  ;;  %1038 = vmatpush.msra.mxu3 %v2090_v47  ;;  %v2073_v18 = vld [vmem:[%s3382_s4 + $0x280] sm:$0xff] }
  0x38   : > { %647 = vst [vmem:[#allocation1 + $0x10] ss:$2 sm:$0xff] %v2418_v22  ;;  %v2089_v60 = vld [vmem:[%s3382_s4 + $0x2f0] sm:$0xff]  ;;  %901 = vmatpush.msra.mxu0 %v2054_v62  ;;  %v2103_v62 = vld [vmem:[%s3382_s4 + $0x340] sm:$0xff] }
  0x39   : > { %649 = vst [vmem:[#allocation1 + $0x11] ss:$2 sm:$0xff] %v2421_v23  ;;  %787 = vmatpush.msrb.mxu2 %v2026_v24  ;;  %1039 = vmatpush.msra.mxu3 %v2089_v60  ;;  %v2105_v47 = vld [vmem:[%s3382_s4 + $0x350] sm:$0xff]  ;;  %v2104_v60 = vld [vmem:[%s3382_s4 + $0x348] sm:$0xff] }
  0x3a   : > { %902 = vmatpush.msra.mxu0 %v2053_v6  ;;  %v2119_v53 = vld [vmem:[%s3382_s4 + $0x3b0] sm:$0xff]  ;;  %v2116_v6 = vld [vmem:[%s3382_s4 + $0x398] sm:$0xff] }
  0x3b   : > { %788 = vmatpush.msrb.mxu2 %v2025_v28  ;;  %1040 = vmatpush.msra.mxu3 %v2088_v2 }
  0x3d   : > { %990 = vmatpush.msra.mxu2 %v2080_v35  ;;  %v2109_v35 = vld [vmem:[%s3382_s4 + $0x370] sm:$0xff] }
  0x3e   : > { %v650_v9 = vld.sshfl [vmem:[#allocation1] sm:$0xff pattern:$0x75316420]  ;;  %1996 = vmatmul.msk.f32.gmra.mxu3 %vm464_vm0, %v604_v61 }
  0x3f   : > { %713 = vst [vmem:[#allocation1] ss:$2 sm:$0xff] %v2007_v1  ;;  %2005 = vmatmul.msk.f32.vlgmr.msrb.gmra.mxu0 %vm464_vm0, %v650_v9  ;;  %991 = vmatpush.msra.mxu2 %v2079_v41  ;;  %v2077_v61 = vld [vmem:[%s3382_s4 + $0x2a0] sm:$0xff]  ;;  %v2068_v1 = vld [vmem:[%s3382_s4 + $0x268] sm:$0xff] }
  0x40   : > { %715 = vst [vmem:[#allocation1 + $0x1] ss:$2 sm:$0xff] %v2009_v3  ;;  %v651_v15 = vld.sshfl [vmem:[#allocation1 + $0x10] sm:$0xff pattern:$0x75316420]  ;;  %v2087_v9 = vld [vmem:[%s3382_s4 + $0x2e0] sm:$0xff]  ;;  %944 = vmatpush.msra.mxu1 %v2068_v1  ;;  %1085 = vmatpush.msrb.mxu0 %v2100_v16 }
  0x41   : > { %717 = vst [vmem:[#allocation1 + $0x10] ss:$2 sm:$0xff] %v2011_v7  ;;  %992 = vmatpush.msra.mxu2 %v2078_v46  ;;  %1041 = vmatpush.msra.mxu3 %v2087_v9  ;;  %v2093_v41 = vld [vmem:[%s3382_s4 + $0x300] sm:$0xff]  ;;  %v2120_v46 = vld [vmem:[%s3382_s4 + $0x3b8] sm:$0xff]  ;;  %v2115_v9 = vld [vmem:[%s3382_s4 + $0x390] sm:$0xff] }
  0x42   : > { %719 = vst [vmem:[#allocation1 + $0x11] ss:$2 sm:$0xff] %v2013_v10  ;;  %945 = vmatpush.msra.mxu1 %v2067_v8  ;;  %1086 = vmatpush.msrb.mxu0 %v2099_v21  ;;  %v2117_v1 = vld [vmem:[%s3382_s4 + $0x3a0] sm:$0xff]  ;;  %v2131_v8 = vld [vmem:[%s3382_s4 + $0x3f0] sm:$0xff]  ;;  %v2126_v21 = vld [vmem:[%s3382_s4 + $0x3c8] sm:$0xff] }
  0x43   : > { %993 = vmatpush.msra.mxu2 %v2077_v61  ;;  %1042 = vmatpush.msra.mxu3 %v2086_v14  ;;  %v2118_v61 = vld [vmem:[%s3382_s4 + $0x3a8] sm:$0xff]  ;;  %v2129_v14 = vld [vmem:[%s3382_s4 + $0x3e0] sm:$0xff] }
  0x44   : > { %946 = vmatpush.msra.mxu1 %v2066_v13  ;;  %1087 = vmatpush.msrb.mxu0 %v2098_v27  ;;  %v2114_v13 = vld [vmem:[%s3382_s4 + $0x388] sm:$0xff] }
  0x45   : > { %994 = vmatpush.msra.mxu2 %v2076_v5  ;;  %1043 = vmatpush.msra.mxu3 %v2085_v20  ;;  %v2132_v5 = vld [vmem:[%s3382_s4 + $0x3f8] sm:$0xff]  ;;  %v2127_v20 = vld [vmem:[%s3382_s4 + $0x3d0] sm:$0xff] }
  0x46   : > { %947 = vmatpush.msra.mxu1 %v2065_v17  ;;  %v2113_v17 = vld [vmem:[%s3382_s4 + $0x380] sm:$0xff] }
  0x47   : > { %v720_v31 = vld.sshfl [vmem:[#allocation1] sm:$0xff pattern:$0x75316420]  ;;  %2006 = vmatmul.msk.f32.gmra.mxu0 %vm464_vm0, %v651_v15  ;;  %v2074_v15 = vld [vmem:[%s3382_s4 + $0x288] sm:$0xff]  ;;  %995 = vmatpush.msra.mxu2 %v2075_v12 }
  0x48   : > { %760 = vst [vmem:[#allocation1] ss:$2 sm:$0xff] %v2526_v54  ;;  %2023 = vmatmul.msk.f32.vlgmr.msrb.gmra.mxu1 %vm464_vm0, %v720_v31  ;;  %1044 = vmatpush.msra.mxu3 %v2084_v26  ;;  %v2097_v31 = vld [vmem:[%s3382_s4 + $0x320] sm:$0xff] }
  0x49   : > { %762 = vst [vmem:[#allocation1 + $0x1] ss:$2 sm:$0xff] %v2528_v55  ;;  %v721_v40 = vld.sshfl [vmem:[#allocation1 + $0x10] sm:$0xff pattern:$0x75316420]  ;;  %996 = vmatpush.msra.mxu2 %v2074_v15  ;;  %948 = vmatpush.msra.mxu1 %v2064_v25  ;;  %v2125_v25 = vld [vmem:[%s3382_s4 + $0x3c0] sm:$0xff] }
  0x4a   : > { %764 = vst [vmem:[#allocation1 + $0x10] ss:$2 sm:$0xff] %v2532_v57  ;;  %1045 = vmatpush.msra.mxu3 %v2083_v30  ;;  %1088 = vmatpush.msrb.mxu0 %v2097_v31  ;;  %v425_v15 = vld [vmem:[%s2400_s16 + $0x20] sm:$0x1f] }
  0x4b   : > { %766 = vst [vmem:[#allocation1 + $0x11] ss:$2 sm:$0xff] %v2535_v58  ;;  %997 = vmatpush.msra.mxu2 %v2073_v18  ;;  %949 = vmatpush.msra.mxu1 %v2063_v29  ;;  %v2128_v18 = vld [vmem:[%s3382_s4 + $0x3d8] sm:$0xff] }
  0x4c   : > { %1089 = vmatpush.msrb.mxu0 %v2096_v32 }
  0x4d   : > { %1132 = vmatpush.msrb.mxu1 %v2110_v33 }
  0x4e   : > { %1090 = vmatpush.msrb.mxu0 %v2095_v34 }
  0x4f   : > { %1133 = vmatpush.msrb.mxu1 %v2109_v35 }
  0x50   : > { %v767_v0 = vld.sshfl [vmem:[#allocation1] sm:$0xff pattern:$0x75316420]  ;;  %2024 = vmatmul.msk.f32.gmra.mxu1 %vm464_vm0, %v721_v40  ;;  %1091 = vmatpush.msrb.mxu0 %v2094_v37 }
  0x51   : > { %2033 = vmatmul.msk.f32.vlgmr.msrb.gmra.mxu2 %vm464_vm0, %v767_v0  ;;  %827 = vst [vmem:[#allocation1] ss:$2 sm:$0xff] %v2035_v50  ;;  %1134 = vmatpush.msrb.mxu1 %v2108_v38  ;;  %v2825_v0 = vld [vmem:[%s2452_s24 + $0x20] sm:$0x1f]  ;;  %v2149_v38 = vld [vmem:[%s3384_s6 + $0xf0] sm:$0xff] }
  0x52   : > { %829 = vst [vmem:[#allocation1 + $0x1] ss:$2 sm:$0xff] %v2037_v59  ;;  %v768_v11 = vld.sshfl [vmem:[#allocation1 + $0x10] sm:$0xff pattern:$0x75316420]  ;;  %1092 = vmatpush.msrb.mxu0 %v2093_v41  ;;  %1179 = vmatpush.msrb.mxu2 %v2120_v46 }
  0x53   : > { %831 = vst [vmem:[#allocation1 + $0x10] ss:$2 sm:$0xff] %v2039_v63  ;;  %1135 = vmatpush.msrb.mxu1 %v2107_v42  ;;  %v2148_v42 = vld [vmem:[%s3384_s6 + $0xe8] sm:$0xff] }
  0x54   : > { %833 = vst [vmem:[#allocation1 + $0x11] ss:$2 sm:$0xff] %v2041_v4  ;;  %1180 = vmatpush.msrb.mxu2 %v2119_v53  ;;  %v2147_v53 = vld [vmem:[%s3384_s6 + $0xe0] sm:$0xff] }
  0x55   : > { %1136 = vmatpush.msrb.mxu1 %v2106_v43 }
  0x56   : > { %1181 = vmatpush.msrb.mxu2 %v2118_v61 }
  0x57   : > { %1137 = vmatpush.msrb.mxu1 %v2105_v47 }
  0x58   : > { %1182 = vmatpush.msrb.mxu2 %v2117_v1 }
  0x59   : > { %v834_v24 = vld.sshfl [vmem:[#allocation1] sm:$0xff pattern:$0x75316420]  ;;  %2034 = vmatmul.msk.f32.gmra.mxu2 %vm464_vm0, %v768_v11  ;;  %1138 = vmatpush.msrb.mxu1 %v2104_v60  ;;  %v2130_v11 = vld [vmem:[%s3382_s4 + $0x3e8] sm:$0xff] }
  0x5a   : > { %2051 = vmatmul.msk.f32.vlgmr.msrb.gmra.mxu3 %vm464_vm0, %v834_v24  ;;  %874 = vst [vmem:[#allocation1] ss:$2 sm:$0xff] %v2508_v48  ;;  %1183 = vmatpush.msrb.mxu2 %v2116_v6 }
  0x5b   : > { %876 = vst [vmem:[#allocation1 + $0x1] ss:$2 sm:$0xff] %v2510_v49  ;;  %v835_v28 = vld.sshfl [vmem:[#allocation1 + $0x10] sm:$0xff pattern:$0x75316420]  ;;  %1139 = vmatpush.msrb.mxu1 %v2103_v62  ;;  %1231 = vmatpush.msrb.mxu3 %v2132_v5 }
  0x5c   : > { %878 = vst [vmem:[#allocation1 + $0x10] ss:$2 sm:$0xff] %v2515_v51  ;;  %1184 = vmatpush.msrb.mxu2 %v2115_v9  ;;  %v2123_v51 = vrot.slane %v2825_v0, 9 }
  0x5d   : > { %880 = vst [vmem:[#allocation1 + $0x11] ss:$2 sm:$0xff] %v2518_v52  ;;  %1232 = vmatpush.msrb.mxu3 %v2131_v8 }
  0x5e   : > { %1185 = vmatpush.msrb.mxu2 %v2114_v13 }
  0x5f   : > { %1233 = vmatpush.msrb.mxu3 %v2130_v11 }
  0x60   : > { %1186 = vmatpush.msrb.mxu2 %v2113_v17 }
  0x61   : > { %1234 = vmatpush.msrb.mxu3 %v2129_v14 }
  0x62   : > { %2052 = vmatmul.msk.f32.gmra.mxu3 %vm464_vm0, %v835_v28  ;;  %v881_v36 = vld.sshfl [vmem:[#allocation1] sm:$0xff pattern:$0x75316420] }
  0x63   : > { %2061 = vmatmul.msk.f32.vlgmr.msra.gmra.mxu0 %vm464_vm0, %v881_v36  ;;  %921 = vst [vmem:[#allocation1] ss:$2 sm:$0xff] %v2526_v54  ;;  %1235 = vmatpush.msrb.mxu3 %v2128_v18  ;;  %v2150_v36 = vld [vmem:[%s3384_s6 + $0xf8] sm:$0xff] }
  0x64   : > { %923 = vst [vmem:[#allocation1 + $0x1] ss:$2 sm:$0xff] %v2528_v55  ;;  %v882_v40 = vld.sshfl [vmem:[#allocation1 + $0x10] sm:$0xff pattern:$0x75316420]  ;;  %1352 = vmatpush.msra.mxu0 %v2150_v36 }
  0x65   : > { %925 = vst [vmem:[#allocation1 + $0x10] ss:$2 sm:$0xff] %v2532_v57  ;;  %1236 = vmatpush.msrb.mxu3 %v2127_v20  ;;  %v2145_v20 = vld [vmem:[%s3384_s6 + $0xd0] sm:$0xff] }
  0x66   : > { %927 = vst [vmem:[#allocation1 + $0x11] ss:$2 sm:$0xff] %v2535_v58  ;;  %1353 = vmatpush.msra.mxu0 %v2149_v38  ;;  %v1290_v38 = vld [vmem:[%s3384_s6 + $0x48] sm:$0xff] }
  0x67   : > { %1237 = vmatpush.msrb.mxu3 %v2126_v21 }
  0x68   : > { %1354 = vmatpush.msra.mxu0 %v2148_v42  ;;  %v1289_v42 = vld [vmem:[%s3384_s6 + $0x40] sm:$0xff] }
  0x69   : > { %1238 = vmatpush.msrb.mxu3 %v2125_v25 }
  0x6a   : > { %1355 = vmatpush.msra.mxu0 %v2147_v53 }
  0x6b   : > { %v928_v56 = vld.sshfl [vmem:[#allocation1] sm:$0xff pattern:$0x75316420]  ;;  %2062 = vmatmul.msk.f32.gmra.mxu0 %vm464_vm0, %v882_v40 }
  0x6c   : > { %969 = vst [vmem:[#allocation1] ss:$2 sm:$0xff] %v2479_v39  ;;  %2071 = vmatmul.msk.f32.vlgmr.msra.gmra.mxu1 %vm464_vm0, %v928_v56 }
  0x6d   : > { %971 = vst [vmem:[#allocation1 + $0x1] ss:$2 sm:$0xff] %v2493_v44  ;;  %v929_v2 = vld.sshfl [vmem:[#allocation1 + $0x10] sm:$0xff pattern:$0x75316420] }
  0x6e   : > { %973 = vst [vmem:[#allocation1 + $0x10] ss:$2 sm:$0xff] %v2496_v45 }
  0x6f   : > { %975 = vst [vmem:[#allocation1 + $0x11] ss:$2 sm:$0xff] %v2825_v0 }
  0x74   : > { %v976_v12 = vld.sshfl [vmem:[#allocation1] sm:$0xff pattern:$0x75316420]  ;;  %2072 = vmatmul.msk.f32.gmra.mxu1 %vm464_vm0, %v929_v2 }
  0x75   : > { %2081 = vmatmul.msk.f32.vlgmr.msra.gmra.mxu2 %vm464_vm0, %v976_v12  ;;  %1017 = vst [vmem:[#allocation1] ss:$2 sm:$0xff] %v2409_v19 }
  0x76   : > { %1019 = vst [vmem:[#allocation1 + $0x1] ss:$2 sm:$0xff] %v2418_v22  ;;  %v977_v16 = vld.sshfl [vmem:[#allocation1 + $0x10] sm:$0xff pattern:$0x75316420] }
  0x77   : > { %1021 = vst [vmem:[#allocation1 + $0x10] ss:$2 sm:$0xff] %v2421_v23 }
  0x78   : > { %1023 = vst [vmem:[#allocation1 + $0x11] ss:$2 sm:$0xff] %v425_v15 }
  0x7d   : > { %v1024_v24 = vld.sshfl [vmem:[#allocation1] sm:$0xff pattern:$0x75316420]  ;;  %2082 = vmatmul.msk.f32.gmra.mxu2 %vm464_vm0, %v977_v16  ;;  %v2146_v16 = vld [vmem:[%s3384_s6 + $0xd8] sm:$0xff] }
  0x7e   : > { %2091 = vmatmul.msk.f32.vlgmr.msra.gmra.mxu3 %vm464_vm0, %v1024_v24  ;;  %1064 = vst [vmem:[#allocation1] ss:$2 sm:$0xff] %v2526_v54  ;;  %1356 = vmatpush.msra.mxu0 %v2146_v16 }
  0x7f   : > { %1066 = vst [vmem:[#allocation1 + $0x1] ss:$2 sm:$0xff] %v2528_v55  ;;  %v1025_v26 = vld.sshfl [vmem:[#allocation1 + $0x10] sm:$0xff pattern:$0x75316420] }
  0x80   : > { %1068 = vst [vmem:[#allocation1 + $0x10] ss:$2 sm:$0xff] %v2532_v57  ;;  %1357 = vmatpush.msra.mxu0 %v2145_v20  ;;  %v2160_v20 = vld [vmem:[%s3384_s6 + $0x148] sm:$0xff] }
  0x81   : > { %1070 = vst [vmem:[#allocation1 + $0x11] ss:$2 sm:$0xff] %v2535_v58 }
  0x86   : > { %2092 = vmatmul.msk.f32.gmra.mxu3 %vm464_vm0, %v1025_v26  ;;  %v1071_v27 = vld.sshfl [vmem:[#allocation1] sm:$0xff pattern:$0x75316420]  ;;  %v2144_v26 = vld [vmem:[%s3384_s6 + $0xc8] sm:$0xff] }
  0x87   : > { %2101 = vmatmul.msk.f32.vlgmr.msrb.gmra.mxu0 %vm464_vm0, %v1071_v27  ;;  %1111 = vst [vmem:[#allocation1] ss:$2 sm:$0xff] %v2035_v50 }
  0x88   : > { %1113 = vst [vmem:[#allocation1 + $0x1] ss:$2 sm:$0xff] %v2037_v59  ;;  %v1072_v54 = vld.sshfl [vmem:[#allocation1 + $0x10] sm:$0xff pattern:$0x75316420]  ;;  %1358 = vmatpush.msra.mxu0 %v2144_v26 }
  0x89   : > { %1115 = vst [vmem:[#allocation1 + $0x10] ss:$2 sm:$0xff] %v2039_v63  ;;  %v2157_v26 = vld [vmem:[%s3384_s6 + $0x130] sm:$0xff] }
  0x8a   : > { %1117 = vst [vmem:[#allocation1 + $0x11] ss:$2 sm:$0xff] %v2041_v4 }
  0x8f   : > { %2102 = vmatmul.msk.f32.gmra.mxu0 %vm464_vm0, %v1072_v54  ;;  %v1118_v55 = vld.sshfl [vmem:[#allocation1] sm:$0xff pattern:$0x75316420] }
  0x90   : > { %2111 = vmatmul.msk.f32.vlgmr.msrb.gmra.mxu1 %vm464_vm0, %v1118_v55  ;;  %1158 = vst [vmem:[#allocation1] ss:$2 sm:$0xff] %v2409_v19  ;;  %v2143_v54 = vld [vmem:[%s3384_s6 + $0xc0] sm:$0xff] }
  0x91   : > { %1160 = vst [vmem:[#allocation1 + $0x1] ss:$2 sm:$0xff] %v2418_v22  ;;  %v1119_v48 = vld.sshfl [vmem:[#allocation1 + $0x10] sm:$0xff pattern:$0x75316420]  ;;  %1359 = vmatpush.msra.mxu0 %v2143_v54  ;;  %v2155_v54 = vld [vmem:[%s3384_s6 + $0x120] sm:$0xff] }
  0x92   : > { %1162 = vst [vmem:[#allocation1 + $0x10] ss:$2 sm:$0xff] %v2421_v23 }
  0x93   : > { %1164 = vst [vmem:[#allocation1 + $0x11] ss:$2 sm:$0xff] %v425_v15 }
  0x98   : > { %2112 = vmatmul.msk.f32.gmra.mxu1 %vm464_vm0, %v1119_v48  ;;  %v1165_v49 = vld.sshfl [vmem:[#allocation1] sm:$0xff pattern:$0x75316420] }
  0x99   : > { %2121 = vmatmul.msk.f32.vlgmr.msrb.gmra.mxu2 %vm464_vm0, %v1165_v49  ;;  %1210 = vst [vmem:[#allocation1] ss:$2 sm:$0xff] %v2009_v3  ;;  %v2267_v49 = vld [vmem:[%s3383_s5] ss:$0 sm:$0xff] }
  0x9a   : > { %1212 = vst [vmem:[#allocation1 + $0x1] ss:$2 sm:$0xff] %v2011_v7  ;;  %v1166_v19 = vld.sshfl [vmem:[#allocation1 + $0x10] sm:$0xff pattern:$0x75316420]  ;;  %v486_v52 = vpop.f32.mrf.mxu0 }
  0x9b   : > { %1214 = vst [vmem:[#allocation1 + $0x10] ss:$2 sm:$0xff] %v2013_v10 }
  0x9c   : > { %1216 = vst [vmem:[#allocation1 + $0x11] ss:$2 sm:$0xff] %v2123_v51  ;;  %v2142_v51 = vld [vmem:[%s3384_s6 + $0xb8] sm:$0xff] }
  0x9d   : > { %1360 = vmatpush.msra.mxu0 %v2142_v51 }
  0xa1   : > { %2122 = vmatmul.msk.f32.gmra.mxu2 %vm464_vm0, %v1166_v19  ;;  %v1217_v22 = vld.sshfl [vmem:[#allocation1] sm:$0xff pattern:$0x75316420]  ;;  %v526_v57 = vpop.f32.mrf.mxu1  ;;  %v1296_v19 = vld [vmem:[%s3384_s6 + $0x78] sm:$0xff] }
  0xa2   : > { %2133 = vmatmul.msk.f32.vlgmr.msrb.gmra.mxu3 %vm464_vm0, %v1217_v22  ;;  %v489_v58 = vpop.f32.mrf.mxu0  ;;  %v527_v45 = vadd.f32 %v526_v57, %v486_v52  ;;  %1395 = vmatpush.msra.mxu1 %v1296_v19 }
  0xa3   : > { %v1218_v23 = vld.sshfl [vmem:[#allocation1 + $0x10] sm:$0xff pattern:$0x75316420] }
  0xa9   : > { %v529_v44 = vpop.f32.mrf.mxu1 }
  0xaa   : > { %2134 = vmatmul.msk.f32.gmra.mxu3 %vm464_vm0, %v1218_v23  ;;  %v530_v30 = vadd.f32 %v529_v44, %v489_v58  ;;  %v1295_v58 = vld [vmem:[%s3384_s6 + $0x70] sm:$0xff] }
  0xab   : > { %1396 = vmatpush.msra.mxu1 %v1295_v58 }
  0xb0   : > { %v575_v39 = vpop.f32.mrf.mxu2 }
  0xb1   : > { %v581_v63 = vadd.f32 %v575_v39, %v527_v45  ;;  %v2141_v39 = vld [vmem:[%s3384_s6 + $0xb0] sm:$0xff] }
  0xb2   : > { %1361 = vmatpush.msra.mxu0 %v2141_v39 }
  0xb8   : > { %v578_v7 = vpop.f32.mrf.mxu2 }
  0xb9   : > { %v626_v3 = vpop.f32.mrf.mxu3  ;;  %v582_v34 = vadd.f32 %v578_v7, %v530_v30  ;;  %v2140_v7 = vld [vmem:[%s3384_s6 + $0xa8] sm:$0xff]  ;;  %v2138_v30 = vld [vmem:[%s3384_s6 + $0x98] sm:$0xff] }
  0xba   : > { %v632_v28 = vadd.f32 %v626_v3, %v581_v63  ;;  %1362 = vmatpush.msra.mxu0 %v2140_v7  ;;  %v2139_v63 = vld [vmem:[%s3384_s6 + $0xa0] sm:$0xff]  ;;  %v2152_v7 = vld [vmem:[%s3384_s6 + $0x108] sm:$0xff] }
  0xbc   : > { %v673_v50 = vpop.f32.mrf.mxu0  ;;  %1363 = vmatpush.msra.mxu0 %v2139_v63 }
  0xbd   : > { %v679_v33 = vadd.f32 %v673_v50, %v632_v28  ;;  %v1294_v50 = vld [vmem:[%s3384_s6 + $0x68] sm:$0xff] }
  0xbe   : > { %1397 = vmatpush.msra.mxu1 %v1294_v50  ;;  %1364 = vmatpush.msra.mxu0 %v2138_v30 }
  0xc1   : > { %v629_v59 = vpop.f32.mrf.mxu3 }
  0xc2   : > { %v633_v40 = vadd.f32 %v629_v59, %v582_v34  ;;  %v2137_v34 = vld [vmem:[%s3384_s6 + $0x90] sm:$0xff] }
  0xc3   : > { %1365 = vmatpush.msra.mxu0 %v2137_v34 }
  0xc4   : > { %v676_v29 = vpop.f32.mrf.mxu0 }
  0xc5   : > { %v743_v10 = vpop.f32.mrf.mxu1  ;;  %v680_v56 = vadd.f32 %v676_v29, %v633_v40 }
  0xc6   : > { %v749_v37 = vadd.f32 %v743_v10, %v679_v33 }
  0xcd   : > { %v746_v32 = vpop.f32.mrf.mxu1 }
  0xce   : > { %v750_v62 = vadd.f32 %v746_v32, %v680_v56  ;;  %v1288_v56 = vld [vmem:[%s3384_s6 + $0x38] sm:$0xff] }
  0xd4   : > { %v790_v4 = vpop.f32.mrf.mxu2 }
  0xd5   : > { %v796_v46 = vadd.f32 %v790_v4, %v749_v37  ;;  %v1293_v4 = vld [vmem:[%s3384_s6 + $0x60] sm:$0xff]  ;;  %v2136_v37 = vld [vmem:[%s3384_s6 + $0x88] sm:$0xff] }
  0xd6   : > { %1398 = vmatpush.msra.mxu1 %v1293_v4  ;;  %1366 = vmatpush.msra.mxu0 %v2136_v37 }
  0xdc   : > { %v793_v35 = vpop.f32.mrf.mxu2 }
  0xdd   : > { %v857_v31 = vpop.f32.mrf.mxu3  ;;  %v797_v2 = vadd.f32 %v793_v35, %v750_v62  ;;  %v1291_v35 = vld [vmem:[%s3384_s6 + $0x50] sm:$0xff] }
  0xde   : > { %v863_v60 = vadd.f32 %v857_v31, %v796_v46  ;;  %v1292_v31 = vld [vmem:[%s3384_s6 + $0x58] sm:$0xff]  ;;  %v2165_v62 = vld [vmem:[%s3384_s6 + $0x170] sm:$0xff] }
  0xdf   : > { %1399 = vmatpush.msra.mxu1 %v1292_v31  ;;  %v2182_v31 = vld [vmem:[%s3384_s6 + $0x1f8] sm:$0xff] }
  0xe0   : > { %v904_v41 = vpop.f32.mrf.mxu0  ;;  %1541 = vmatpush.msra.mxu3 %v2182_v31  ;;  %v1575_v31 = vld [vmem:[%s3386_s8 + $0x8] sm:$0xff] }
  0xe1   : > { %v910_v0 = vadd.f32 %v904_v41, %v863_v60  ;;  %1400 = vmatpush.msra.mxu1 %v1291_v35  ;;  %v2135_v41 = vld [vmem:[%s3384_s6 + $0x80] sm:$0xff]  ;;  %v2166_v60 = vld [vmem:[%s3384_s6 + $0x178] sm:$0xff] }
  0xe2   : > { %1367 = vmatpush.msra.mxu0 %v2135_v41  ;;  %1461 = vmatpush.msra.mxu2 %v2166_v60  ;;  %v2179_v35 = vld [vmem:[%s3384_s6 + $0x1e0] sm:$0xff]  ;;  %v2178_v41 = vld [vmem:[%s3384_s6 + $0x1d8] sm:$0xff] }
  0xe3   : > { %1401 = vmatpush.msra.mxu1 %v1290_v38 }
  0xe4   : > { %1462 = vmatpush.msra.mxu2 %v2165_v62  ;;  %v2174_v62 = vld [vmem:[%s3384_s6 + $0x1b8] sm:$0xff] }
  0xe5   : > { %v860_v43 = vpop.f32.mrf.mxu3  ;;  %1402 = vmatpush.msra.mxu1 %v1289_v42 }
  0xe6   : > { %v864_v9 = vadd.f32 %v860_v43, %v797_v2  ;;  %v1285_v2 = vld [vmem:[%s3384_s6 + $0x20] sm:$0xff] }
  0xe7   : > { %1403 = vmatpush.msra.mxu1 %v1288_v56  ;;  %v2175_v56 = vld [vmem:[%s3384_s6 + $0x1c0] sm:$0xff] }
  0xe8   : > { %v907_v1 = vpop.f32.mrf.mxu0 }
  0xe9   : > { %v951_v47 = vpop.f32.mrf.mxu1  ;;  %v911_v13 = vadd.f32 %v907_v1, %v864_v9  ;;  %v2164_v1 = vld [vmem:[%s3384_s6 + $0x168] sm:$0xff] }
  0xea   : > { %v957_v8 = vadd.f32 %v951_v47, %v910_v0  ;;  %v1286_v0 = vld [vmem:[%s3384_s6 + $0x28] sm:$0xff]  ;;  %1463 = vmatpush.msra.mxu2 %v2164_v1 }
  0xf1   : > { %v954_v6 = vpop.f32.mrf.mxu1 }
  0xf2   : > { %v958_v21 = vadd.f32 %v954_v6, %v911_v13  ;;  %v1283_v13 = vld [vmem:[%s3384_s6 + $0x10] sm:$0xff] }
  0xf8   : > { %v999_v61 = vpop.f32.mrf.mxu2 }
  0xf9   : > { %v1005_v12 = vadd.f32 %v999_v61, %v957_v8  ;;  %v1287_v61 = vld [vmem:[%s3384_s6 + $0x30] sm:$0xff] }
  0xfa   : > { %1404 = vmatpush.msra.mxu1 %v1287_v61 }
  0xfc   : > { %1405 = vmatpush.msra.mxu1 %v1286_v0  ;;  %v2173_v0 = vld [vmem:[%s3384_s6 + $0x1b0] sm:$0xff] }
  0xfe   : > { %1406 = vmatpush.msra.mxu1 %v1285_v2  ;;  %v2172_v2 = vld [vmem:[%s3384_s6 + $0x1a8] sm:$0xff] }
 0x100   : > { %v1002_v11 = vpop.f32.mrf.mxu2 }
 0x101   : > { %v1047_v5 = vpop.f32.mrf.mxu3  ;;  %v1006_v55 = vadd.f32 %v1002_v11, %v958_v21  ;;  %v1284_v11 = vld [vmem:[%s3384_s6 + $0x18] sm:$0xff]  ;;  %v1281_v21 = vld [vmem:[%s3384_s6] sm:$0xff] }
 0x102   : > { %v1053_v14 = vadd.f32 %v1047_v5, %v1005_v12  ;;  %v2163_v5 = vld [vmem:[%s3384_s6 + $0x160] sm:$0xff]  ;;  %v2162_v12 = vld [vmem:[%s3384_s6 + $0x158] sm:$0xff]  ;;  %1407 = vmatpush.msra.mxu1 %v1284_v11  ;;  %v2169_v11 = vld [vmem:[%s3384_s6 + $0x190] sm:$0xff] }
 0x103   : > { %1464 = vmatpush.msra.mxu2 %v2163_v5  ;;  %v2171_v5 = vld [vmem:[%s3384_s6 + $0x1a0] sm:$0xff] }
 0x104   : > { %v1094_v15 = vpop.f32.mrf.mxu0  ;;  %1408 = vmatpush.msra.mxu1 %v1283_v13  ;;  %v2167_v13 = vld [vmem:[%s3384_s6 + $0x180] sm:$0xff] }
 0x105   : > { %v1100_v24 = vadd.f32 %v1094_v15, %v1053_v14  ;;  %1465 = vmatpush.msra.mxu2 %v2162_v12  ;;  %v2168_v12 = vld [vmem:[%s3384_s6 + $0x188] sm:$0xff] }
 0x109   : > { %v1050_v17 = vpop.f32.mrf.mxu3 }
 0x10a   : > { %v1054_v22 = vadd.f32 %v1050_v17, %v1006_v55  ;;  %v2161_v17 = vld [vmem:[%s3384_s6 + $0x150] sm:$0xff] }
 0x10b   : > { %1466 = vmatpush.msra.mxu2 %v2161_v17 }
 0x10c   : > { %v1097_v52 = vpop.f32.mrf.mxu0 }
 0x10d   : > { %v1141_v18 = vpop.f32.mrf.mxu1  ;;  %v1101_v59 = vadd.f32 %v1097_v52, %v1054_v22  ;;  %1467 = vmatpush.msra.mxu2 %v2160_v20  ;;  %v2153_v52 = vld [vmem:[%s3384_s6 + $0x110] sm:$0xff] }
 0x10e   : > { %v1147_v27 = vadd.f32 %v1141_v18, %v1100_v24  ;;  %v1282_v18 = vld [vmem:[%s3384_s6 + $0x8] sm:$0xff]  ;;  %v2159_v24 = vld [vmem:[%s3384_s6 + $0x140] sm:$0xff] }
 0x10f   : > { %1409 = vmatpush.msra.mxu1 %v1282_v18  ;;  %1468 = vmatpush.msra.mxu2 %v2159_v24 }
 0x111   : > { %1410 = vmatpush.msra.mxu1 %v1281_v21 }
 0x115   : > { %v1144_v3 = vpop.f32.mrf.mxu1 }
 0x116   : > { %v1148_v28 = vadd.f32 %v1144_v3, %v1101_v59 }
 0x11c   : > { %v1188_v25 = vpop.f32.mrf.mxu2 }
 0x11d   : > { %v1194_v48 = vadd.f32 %v1188_v25, %v1147_v27  ;;  %v2158_v25 = vld [vmem:[%s3384_s6 + $0x138] sm:$0xff]  ;;  %v2156_v27 = vld [vmem:[%s3384_s6 + $0x128] sm:$0xff] }
 0x11e   : > { %1469 = vmatpush.msra.mxu2 %v2158_v25 }
 0x120   : > { %1470 = vmatpush.msra.mxu2 %v2157_v26 }
 0x122   : > { %1471 = vmatpush.msra.mxu2 %v2156_v27  ;;  %v2190_v27 = vld [vmem:[%s3386_s8 + $0x78] sm:$0xff] }
 0x123   : > { %1603 = vmatpush.msrb.mxu0 %v2190_v27 }
 0x124   : > { %v1191_v45 = vpop.f32.mrf.mxu2  ;;  %1472 = vmatpush.msra.mxu2 %v2155_v54  ;;  %v2189_v54 = vld [vmem:[%s3386_s8 + $0x70] sm:$0xff] }
 0x125   : > { %v1240_v23 = vpop.f32.mrf.mxu3  ;;  %v1195_v32 = vadd.f32 %v1191_v45, %v1148_v28  ;;  %1604 = vmatpush.msrb.mxu0 %v2189_v54 }
 0x126   : > { %v1246_v57 = vadd.f32 %v1240_v23, %v1194_v48  ;;  %v2154_v23 = vld [vmem:[%s3384_s6 + $0x118] sm:$0xff] }
 0x127   : > { %1473 = vmatpush.msra.mxu2 %v2154_v23  ;;  %v2199_v23 = vld [vmem:[%s3386_s8 + $0xb0] sm:$0xff] }
 0x128   : > { %v1252_v44 = vadd.f32 %v2267_v49, %v1246_v57 }
 0x129   : > { %1474 = vmatpush.msra.mxu2 %v2153_v52  ;;  %v2208_v52 = vld [vmem:[%s3386_s8 + $0xf0] sm:$0xff] }
 0x12a   : > { %v2953_v10 = vmax.f32 %v1252_v44, 0.0 }
 0x12b   : > { %1475 = vmatpush.msra.mxu2 %v2152_v7  ;;  %v2197_v7 = vld [vmem:[%s3386_s8 + $0xa0] sm:$0xff] }
 0x12c   : > { %v2962_v29 = vrot.slane %v2953_v10, 4  ;;  %1297 = vst [vmem:[#allocation1] sm:$0xff] %v2953_v10  ;;  %v1260_v48 = vrot.slane %v2953_v10, 3 }
 0x12d   : > { %v1243_v33 = vpop.f32.mrf.mxu3 }
 0x12e   : > { %1304 = vst [vmem:[#allocation1 + $0x20] sm:$0xff] %v2962_v29  ;;  %v1247_v36 = vadd.f32 %v1243_v33, %v1195_v32  ;;  %v1261_v51 = vrot.slane %v2962_v29, 3  ;;  %v1266_v19 = vsel %vm1265_vm1, %v2953_v10, %v1260_v48  ;;  %v1269_v22 = vsel %vm1268_vm2, %v2953_v10, %v1260_v48  ;;  %v2181_v32 = vld [vmem:[%s3384_s6 + $0x1f0] sm:$0xff]  ;;  %v2180_v33 = vld [vmem:[%s3384_s6 + $0x1e8] sm:$0xff] }
 0x12f   : > { %v1264_v58 = vsel %vm1263_vm3, %v2953_v10, %v1260_v48  ;;  %v1267_v3 = vrot.slane %v1266_v19, 1  ;;  %v1270_v50 = vrot.slane %v1269_v22, 2  ;;  %v2151_v10 = vld [vmem:[%s3384_s6 + $0x100] sm:$0xff]  ;;  %1542 = vmatpush.msra.mxu3 %v2181_v32  ;;  %v1580_v48 = vld [vmem:[%s3386_s8 + $0x30] sm:$0xff]  ;;  %v2209_v19 = vld [vmem:[%s3386_s8 + $0xf8] sm:$0xff] }
 0x130   : > { %v1253_v40 = vadd.f32 %v2267_v49, %v1247_v36  ;;  %v1272_v44 = vsel %vm1265_vm1, %v2962_v29, %v1261_v51  ;;  %v1274_v59 = vsel %vm1268_vm2, %v2962_v29, %v1261_v51  ;;  %v1271_v63 = vsel %vm1263_vm3, %v2962_v29, %v1261_v51  ;;  %1476 = vmatpush.msra.mxu2 %v2151_v10  ;;  %v2200_v51 = vld [vmem:[%s3386_s8 + $0xb8] sm:$0xff]  ;;  %v1579_v22 = vld [vmem:[%s3386_s8 + $0x28] sm:$0xff]  ;;  %v2204_v32 = vld [vmem:[%s3386_s8 + $0xd0] sm:$0xff] }
 0x131   : > { %v1273_v4 = vrot.slane %v1272_v44, 1  ;;  %v1275_v28 = vrot.slane %v1274_v59, 2  ;;  %1543 = vmatpush.msra.mxu3 %v2180_v33  ;;  %v2186_v44 = vld [vmem:[%s3386_s8 + $0x58] sm:$0xff]  ;;  %v2206_v59 = vld [vmem:[%s3386_s8 + $0xe0] sm:$0xff] }
 0x132   : > { %v2990_v43 = vmax.f32 %v1253_v40, 0.0  ;;  %1657 = vmatpush.msrb.mxu2 %v2200_v51  ;;  %v2196_v10 = vld [vmem:[%s3386_s8 + $0x98] sm:$0xff]  ;;  %v2183_v33 = vld [vmem:[%s3386_s8 + $0x40] sm:$0xff] }
 0x133   : > { %v1299_v46 = vld [vmem:[#allocation1 + $0x1] ss:$4 sm:$0xff]  ;;  %v1301_v47 = vld [vmem:[#allocation1 + $0x2] ss:$4 sm:$0xff]  ;;  %v1303_v53 = vld [vmem:[#allocation1 + $0x3] ss:$4 sm:$0xff]  ;;  %1544 = vmatpush.msra.mxu3 %v2179_v35 }
 0x134   : > { %1311 = vst [vmem:[#allocation1] sm:$0xff] %v2990_v43  ;;  %v1262_v49 = vrot.slane %v2990_v43, 3  ;;  %v1259_v38 = vrot.slane %v2990_v43, 4  ;;  %1658 = vmatpush.msrb.mxu2 %v2199_v23  ;;  %v2218_v35 = vld [vmem:[%s3386_s8 + $0x138] sm:$0xff]  ;;  %v2268_v51 = vld [vmem:[%s3385_s7] ss:$0 sm:$0xff] }
 0x135   : > { %v1306_v6 = vld [vmem:[#allocation1 + $0x21] ss:$4 sm:$0xff]  ;;  %v1308_v8 = vld [vmem:[#allocation1 + $0x22] ss:$4 sm:$0xff]  ;;  %v1310_v9 = vld [vmem:[#allocation1 + $0x23] ss:$4 sm:$0xff]  ;;  %1545 = vmatpush.msra.mxu3 %v2178_v41 }
 0x136   : > { %v1276_v57 = vsel %vm1263_vm3, %v2990_v43, %v1262_v49  ;;  %v1277_v45 = vsel %vm1265_vm1, %v2990_v43, %v1262_v49  ;;  %v1279_v34 = vsel %vm1268_vm2, %v2990_v43, %v1262_v49  ;;  %v1418_v40 = vrot.slane %v1259_v38, 3  ;;  %v2188_v49 = vld [vmem:[%s3386_s8 + $0x68] sm:$0xff]  ;;  %v2227_v41 = vld [vmem:[%s3386_s8 + $0x178] sm:$0xff] }
 0x137   : > { %v1278_v30 = vrot.slane %v1277_v45, 1  ;;  %v1280_v36 = vrot.slane %v1279_v34, 2  ;;  %1605 = vmatpush.msrb.mxu0 %v2188_v49  ;;  %v2185_v45 = vld [vmem:[%s3386_s8 + $0x50] sm:$0xff]  ;;  %v2194_v34 = vld [vmem:[%s3386_s8 + $0x88] sm:$0xff] }
 0x138   : > { %v1419_v60 = vsel %vm1263_vm3, %v1259_v38, %v1418_v40  ;;  %v1422_v1 = vsel %vm1268_vm2, %v1259_v38, %v1418_v40 }
 0x13b   : > { %v1312_v14 = vld [vmem:[#allocation1 + $0x1] ss:$4 sm:$0xff]  ;;  %v1313_v15 = vld [vmem:[#allocation1 + $0x2] ss:$4 sm:$0xff]  ;;  %v1314_v16 = vld [vmem:[#allocation1 + $0x3] ss:$4 sm:$0xff] }
 0x13c   : > { %1332 = vst [vmem:[#allocation1] ss:$9 sm:$0xff] %v1299_v46  ;;  %v2177_v46 = vld [vmem:[%s3384_s6 + $0x1d0] sm:$0xff] }
 0x13d   : > { %1334 = vst [vmem:[#allocation1 + $0x1] ss:$9 sm:$0xff] %v1301_v47  ;;  %1546 = vmatpush.msra.mxu3 %v2177_v46  ;;  %v1420_v47 = vsel %vm1265_vm1, %v1259_v38, %v1418_v40  ;;  %v2216_v40 = vld [vmem:[%s3386_s8 + $0x128] sm:$0xff]  ;;  %v2202_v46 = vld [vmem:[%s3386_s8 + $0xc0] sm:$0xff] }
 0x13e   : > { %1336 = vst [vmem:[#allocation1 + $0x2] ss:$9 sm:$0xff] %v1303_v53  ;;  %v2176_v53 = vld [vmem:[%s3384_s6 + $0x1c8] sm:$0xff]  ;;  %v1421_v61 = vrot.slane %v1420_v47, 1  ;;  %v2215_v47 = vld [vmem:[%s3386_s8 + $0x120] sm:$0xff] }
 0x13f   : > { %1338 = vst [vmem:[#allocation1 + $0x3] ss:$9 sm:$0xff] %v1306_v6  ;;  %1547 = vmatpush.msra.mxu3 %v2176_v53  ;;  %v1423_v6 = vrot.slane %v1422_v1, 2  ;;  %v2226_v53 = vld [vmem:[%s3386_s8 + $0x170] sm:$0xff] }
 0x140   : > { %1340 = vst [vmem:[#allocation1 + $0x4] ss:$9 sm:$0xff] %v1308_v8  ;;  %v2244_v1 = vld [vmem:[%s3386_s8 + $0x1f0] sm:$0xff] }
 0x141   : > { %1342 = vst [vmem:[#allocation1 + $0x5] ss:$9 sm:$0xff] %v1310_v9  ;;  %1548 = vmatpush.msra.mxu3 %v2175_v56  ;;  %v2170_v9 = vld [vmem:[%s3384_s6 + $0x198] sm:$0xff] }
 0x142   : > { %1344 = vst [vmem:[#allocation1 + $0x6] ss:$9 sm:$0xff] %v1312_v14  ;;  %v2236_v56 = vld [vmem:[%s3386_s8 + $0x1b8] sm:$0xff] }
 0x143   : > { %1346 = vst [vmem:[#allocation1 + $0x7] ss:$9 sm:$0xff] %v1313_v15  ;;  %1549 = vmatpush.msra.mxu3 %v2174_v62  ;;  %v2225_v62 = vld [vmem:[%s3386_s8 + $0x168] sm:$0xff] }
 0x145   : > { %1550 = vmatpush.msra.mxu3 %v2173_v0  ;;  %v2235_v0 = vld [vmem:[%s3386_s8 + $0x1b0] sm:$0xff] }
 0x147   : > { %1551 = vmatpush.msra.mxu3 %v2172_v2  ;;  %v2213_v2 = vld [vmem:[%s3386_s8 + $0x110] sm:$0xff] }
 0x149   : > { %1552 = vmatpush.msra.mxu3 %v2171_v5  ;;  %v2224_v5 = vld [vmem:[%s3386_s8 + $0x160] sm:$0xff] }
 0x14a   : > { %v1347_v55 = vld [vmem:[#allocation1] sm:$0xff] }
 0x14b   : > { %1348 = vst [vmem:[#allocation1] ss:$9 sm:$0xff] %v1314_v16  ;;  %1368 = vmatmul.f32.vlgmr.msra.gmra.mxu0 %v1347_v55  ;;  %1553 = vmatpush.msra.mxu3 %v2170_v9  ;;  %v1581_v55 = vld [vmem:[%s3386_s8 + $0x38] sm:$0xff]  ;;  %v2212_v9 = vld [vmem:[%s3386_s8 + $0x108] sm:$0xff] }
 0x14c   : > { %1625 = vmatpush.msrb.mxu1 %v1581_v55 }
 0x14d   : > { %1554 = vmatpush.msra.mxu3 %v2169_v11  ;;  %v2223_v11 = vld [vmem:[%s3386_s8 + $0x158] sm:$0xff] }
 0x14e   : > { %1626 = vmatpush.msrb.mxu1 %v1580_v48 }
 0x14f   : > { %1555 = vmatpush.msra.mxu3 %v2168_v12  ;;  %v2233_v12 = vld [vmem:[%s3386_s8 + $0x1a0] sm:$0xff] }
 0x150   : > { %1627 = vmatpush.msrb.mxu1 %v1579_v22 }
 0x151   : > { %1556 = vmatpush.msra.mxu3 %v2167_v13  ;;  %v2242_v13 = vld [vmem:[%s3386_s8 + $0x1e0] sm:$0xff] }
 0x152   : > { %v1349_v39 = vld [vmem:[#allocation1] sm:$0xff] }
 0x153   : > { %1387 = vst [vmem:[#allocation1 + $0x6] ss:$9 sm:$0xff] %v1276_v57  ;;  %1371 = vmatmul.f32.gmra.mxu0 %v1349_v39  ;;  %1690 = vmatpush.msrb.mxu3 %v2209_v19  ;;  %v2198_v39 = vld [vmem:[%s3386_s8 + $0xa8] sm:$0xff] }
 0x154   : > { %1375 = vst [vmem:[#allocation1] ss:$9 sm:$0xff] %v1264_v58  ;;  %v1578_v58 = vld [vmem:[%s3386_s8 + $0x20] sm:$0xff]  ;;  %1659 = vmatpush.msrb.mxu2 %v2198_v39 }
 0x155   : > { %1377 = vst [vmem:[#allocation1 + $0x1] ss:$9 sm:$0xff] %v1267_v3  ;;  %v2207_v3 = vld [vmem:[%s3386_s8 + $0xe8] sm:$0xff]  ;;  %1691 = vmatpush.msrb.mxu3 %v2208_v52  ;;  %1628 = vmatpush.msrb.mxu1 %v1578_v58 }
 0x156   : > { %1379 = vst [vmem:[#allocation1 + $0x2] ss:$9 sm:$0xff] %v1270_v50  ;;  %v1577_v50 = vld [vmem:[%s3386_s8 + $0x18] sm:$0xff]  ;;  %1660 = vmatpush.msrb.mxu2 %v2197_v7  ;;  %v2253_v7 = vld [vmem:[%s3386_s8 + $0x230] sm:$0xff] }
 0x157   : > { %1381 = vst [vmem:[#allocation1 + $0x3] ss:$9 sm:$0xff] %v1271_v63  ;;  %1692 = vmatpush.msrb.mxu3 %v2207_v3  ;;  %1629 = vmatpush.msrb.mxu1 %v1577_v50  ;;  %v2254_v3 = vld [vmem:[%s3386_s8 + $0x238] sm:$0xff] }
 0x158   : > { %1383 = vst [vmem:[#allocation1 + $0x4] ss:$9 sm:$0xff] %v1273_v4  ;;  %1661 = vmatpush.msrb.mxu2 %v2196_v10  ;;  %v2252_v10 = vld [vmem:[%s3386_s8 + $0x228] sm:$0xff] }
 0x159   : > { %1385 = vst [vmem:[#allocation1 + $0x5] ss:$9 sm:$0xff] %v1275_v28  ;;  %1693 = vmatpush.msrb.mxu3 %v2206_v59 }
 0x15a   : > { %1389 = vst [vmem:[#allocation1 + $0x7] ss:$9 sm:$0xff] %v1278_v30 }
 0x161   : > { %v1390_v37 = vld [vmem:[#allocation1] sm:$0xff] }
 0x162   : > { %1411 = vmatmul.f32.vlgmr.msra.gmra.mxu1 %v1390_v37  ;;  %1391 = vst [vmem:[#allocation1] ss:$9 sm:$0xff] %v1280_v36  ;;  %v2203_v37 = vld [vmem:[%s3386_s8 + $0xc8] sm:$0xff] }
 0x169   : > { %v1392_v42 = vld [vmem:[#allocation1] sm:$0xff] }
 0x16a   : > { %1414 = vmatmul.f32.gmra.mxu1 %v1392_v42  ;;  %1441 = vst [vmem:[#allocation1] ss:$9 sm:$0xff] %v1271_v63  ;;  %v1576_v63 = vld [vmem:[%s3386_s8 + $0x10] sm:$0xff]  ;;  %v2193_v42 = vld [vmem:[%s3386_s8 + $0x80] sm:$0xff] }
 0x16b   : > { %1443 = vst [vmem:[#allocation1 + $0x1] ss:$9 sm:$0xff] %v1273_v4  ;;  %v2205_v4 = vld [vmem:[%s3386_s8 + $0xd8] sm:$0xff]  ;;  %1630 = vmatpush.msrb.mxu1 %v1576_v63 }
 0x16c   : > { %1445 = vst [vmem:[#allocation1 + $0x2] ss:$9 sm:$0xff] %v1275_v28  ;;  %v2184_v28 = vld [vmem:[%s3386_s8 + $0x48] sm:$0xff]  ;;  %1694 = vmatpush.msrb.mxu3 %v2205_v4 }
 0x16d   : > { %1447 = vst [vmem:[#allocation1 + $0x3] ss:$9 sm:$0xff] %v1276_v57  ;;  %v2187_v57 = vld [vmem:[%s3386_s8 + $0x60] sm:$0xff]  ;;  %1631 = vmatpush.msrb.mxu1 %v1575_v31 }
 0x16e   : > { %1449 = vst [vmem:[#allocation1 + $0x4] ss:$9 sm:$0xff] %v1278_v30  ;;  %1606 = vmatpush.msrb.mxu0 %v2187_v57  ;;  %v2195_v30 = vld [vmem:[%s3386_s8 + $0x90] sm:$0xff]  ;;  %1695 = vmatpush.msrb.mxu3 %v2204_v32 }
 0x16f   : > { %1451 = vst [vmem:[#allocation1 + $0x5] ss:$9 sm:$0xff] %v1280_v36  ;;  %1662 = vmatpush.msrb.mxu2 %v2195_v30  ;;  %v1574_v36 = vld [vmem:[%s3386_s8] sm:$0xff] }
 0x170   : > { %1453 = vst [vmem:[#allocation1 + $0x6] ss:$9 sm:$0xff] %v1419_v60  ;;  %1607 = vmatpush.msrb.mxu0 %v2186_v44  ;;  %1632 = vmatpush.msrb.mxu1 %v1574_v36  ;;  %v2245_v60 = vld [vmem:[%s3386_s8 + $0x1f8] sm:$0xff]  ;;  %v2251_v30 = vld [vmem:[%s3386_s8 + $0x220] sm:$0xff]  ;;  %v2249_v36 = vld [vmem:[%s3386_s8 + $0x210] sm:$0xff] }
 0x171   : > { %1455 = vst [vmem:[#allocation1 + $0x7] ss:$9 sm:$0xff] %v1421_v61  ;;  %1663 = vmatpush.msrb.mxu2 %v2194_v34  ;;  %1696 = vmatpush.msrb.mxu3 %v2203_v37  ;;  %v2214_v61 = vld [vmem:[%s3386_s8 + $0x118] sm:$0xff] }
 0x172   : > { %1608 = vmatpush.msrb.mxu0 %v2185_v45  ;;  %1756 = vmatpush.msra.mxu1 %v2227_v41  ;;  %v2250_v34 = vld [vmem:[%s3386_s8 + $0x218] sm:$0xff] }
 0x173   : > { %1664 = vmatpush.msrb.mxu2 %v2193_v42  ;;  %1697 = vmatpush.msrb.mxu3 %v2202_v46 }
 0x174   : > { %1609 = vmatpush.msrb.mxu0 %v2184_v28  ;;  %1757 = vmatpush.msra.mxu1 %v2226_v53 }
 0x176   : > { %1610 = vmatpush.msrb.mxu0 %v2183_v33  ;;  %1758 = vmatpush.msra.mxu1 %v2225_v62 }
 0x178   : > { %v1456_v8 = vld [vmem:[#allocation1] sm:$0xff]  ;;  %1723 = vmatpush.msra.mxu0 %v2218_v35  ;;  %1759 = vmatpush.msra.mxu1 %v2224_v5 }
 0x179   : > { %1477 = vmatmul.f32.vlgmr.msra.gmra.mxu2 %v1456_v8  ;;  %1457 = vst [vmem:[#allocation1] ss:$9 sm:$0xff] %v1423_v6  ;;  %v2234_v6 = vld [vmem:[%s3386_s8 + $0x1a8] sm:$0xff] }
 0x17a   : > { %1493 = vst [vmem:[#allocation1 + $0x20] sm:$0xff] %v2990_v43  ;;  %1789 = vmatpush.msra.mxu2 %v2236_v56  ;;  %v2243_v8 = vld [vmem:[%s3386_s8 + $0x1e8] sm:$0xff]  ;;  %1760 = vmatpush.msra.mxu1 %v2223_v11 }
 0x17c   : > { %1790 = vmatpush.msra.mxu2 %v2235_v0 }
 0x17e   : > { %1791 = vmatpush.msra.mxu2 %v2234_v6 }
 0x180   : > { %v1458_v14 = vld [vmem:[#allocation1] sm:$0xff]  ;;  %1792 = vmatpush.msra.mxu2 %v2233_v12 }
 0x181   : > { %1480 = vmatmul.f32.gmra.mxu2 %v1458_v14  ;;  %1486 = vst [vmem:[#allocation1] sm:$0xff] %v2962_v29  ;;  %v1495_v43 = vld [vmem:[#allocation1 + $0x21] ss:$4 sm:$0xff]  ;;  %v1497_v18 = vld [vmem:[#allocation1 + $0x22] ss:$4 sm:$0xff] }
 0x182   : > { %v1499_v20 = vld [vmem:[#allocation1 + $0x23] ss:$4 sm:$0xff]  ;;  %v1868_v12 = vld [vmem:[%s3387_s9] sm:$0x1] }
 0x183   : > { %v2211_v14 = vld [vmem:[%s3386_s8 + $0x100] sm:$0xff] }
 0x188   : > { %v1488_v15 = vld [vmem:[#allocation1 + $0x1] ss:$4 sm:$0xff]  ;;  %v1490_v16 = vld [vmem:[#allocation1 + $0x2] ss:$4 sm:$0xff]  ;;  %v1492_v17 = vld [vmem:[#allocation1 + $0x3] ss:$4 sm:$0xff] }
 0x189   : > { %1500 = vst [vmem:[#allocation1] sm:$0xff] %v1259_v38  ;;  %v2217_v38 = vld [vmem:[%s3386_s8 + $0x130] sm:$0xff] }
 0x18a   : > { %1724 = vmatpush.msra.mxu0 %v2217_v38  ;;  %v2248_v38 = vld [vmem:[%s3386_s8 + $0x208] sm:$0xff] }
 0x18c   : > { %1725 = vmatpush.msra.mxu0 %v2216_v40  ;;  %v2247_v40 = vld [vmem:[%s3386_s8 + $0x200] sm:$0xff] }
 0x18e   : > { %1726 = vmatpush.msra.mxu0 %v2215_v47 }
 0x190   : > { %v1501_v21 = vld [vmem:[#allocation1 + $0x1] ss:$4 sm:$0xff]  ;;  %v1502_v24 = vld [vmem:[#allocation1 + $0x2] ss:$4 sm:$0xff]  ;;  %v1503_v25 = vld [vmem:[#allocation1 + $0x3] ss:$4 sm:$0xff]  ;;  %1727 = vmatpush.msra.mxu0 %v2214_v61 }
 0x191   : > { %1521 = vst [vmem:[#allocation1] ss:$9 sm:$0xff] %v1488_v15  ;;  %v2222_v15 = vld [vmem:[%s3386_s8 + $0x150] sm:$0xff] }
 0x192   : > { %1523 = vst [vmem:[#allocation1 + $0x1] ss:$9 sm:$0xff] %v1490_v16  ;;  %1728 = vmatpush.msra.mxu0 %v2213_v2  ;;  %v2232_v16 = vld [vmem:[%s3386_s8 + $0x198] sm:$0xff]  ;;  %1761 = vmatpush.msra.mxu1 %v2222_v15 }
 0x193   : > { %1525 = vst [vmem:[#allocation1 + $0x2] ss:$9 sm:$0xff] %v1492_v17  ;;  %v2241_v17 = vld [vmem:[%s3386_s8 + $0x1d8] sm:$0xff]  ;;  %1793 = vmatpush.msra.mxu2 %v2232_v16 }
 0x194   : > { %1527 = vst [vmem:[#allocation1 + $0x3] ss:$9 sm:$0xff] %v1495_v43  ;;  %1729 = vmatpush.msra.mxu0 %v2212_v9  ;;  %v2221_v43 = vld [vmem:[%s3386_s8 + $0x148] sm:$0xff] }
 0x195   : > { %1529 = vst [vmem:[#allocation1 + $0x4] ss:$9 sm:$0xff] %v1497_v18  ;;  %v2231_v18 = vld [vmem:[%s3386_s8 + $0x190] sm:$0xff]  ;;  %1762 = vmatpush.msra.mxu1 %v2221_v43 }
 0x196   : > { %1531 = vst [vmem:[#allocation1 + $0x5] ss:$9 sm:$0xff] %v1499_v20  ;;  %1730 = vmatpush.msra.mxu0 %v2211_v14  ;;  %v2240_v20 = vld [vmem:[%s3386_s8 + $0x1d0] sm:$0xff]  ;;  %1794 = vmatpush.msra.mxu2 %v2231_v18 }
 0x197   : > { %1533 = vst [vmem:[#allocation1 + $0x6] ss:$9 sm:$0xff] %v1501_v21  ;;  %v2220_v21 = vld [vmem:[%s3386_s8 + $0x140] sm:$0xff] }
 0x198   : > { %1535 = vst [vmem:[#allocation1 + $0x7] ss:$9 sm:$0xff] %v1502_v24  ;;  %v2230_v24 = vld [vmem:[%s3386_s8 + $0x188] sm:$0xff]  ;;  %1763 = vmatpush.msra.mxu1 %v2220_v21 }
 0x199   : > { %1795 = vmatpush.msra.mxu2 %v2230_v24 }
 0x19f   : > { %v1536_v26 = vld [vmem:[#allocation1] sm:$0xff] }
 0x1a0   : > { %1557 = vmatmul.f32.vlgmr.msra.gmra.mxu3 %v1536_v26  ;;  %1537 = vst [vmem:[#allocation1] ss:$9 sm:$0xff] %v1503_v25  ;;  %v2239_v25 = vld [vmem:[%s3386_s8 + $0x1c8] sm:$0xff]  ;;  %v2229_v26 = vld [vmem:[%s3386_s8 + $0x180] sm:$0xff] }
 0x1a1   : > { %1822 = vmatpush.msra.mxu3 %v2245_v60  ;;  %1796 = vmatpush.msra.mxu2 %v2229_v26 }
 0x1a3   : > { %1823 = vmatpush.msra.mxu3 %v2244_v1 }
 0x1a5   : > { %1824 = vmatpush.msra.mxu3 %v2243_v8 }
 0x1a7   : > { %v1538_v29 = vld [vmem:[#allocation1] sm:$0xff]  ;;  %1825 = vmatpush.msra.mxu3 %v2242_v13 }
 0x1a8   : > { %1560 = vmatmul.f32.gmra.mxu3 %v1538_v29  ;;  %v2238_v29 = vld [vmem:[%s3386_s8 + $0x1c0] sm:$0xff] }
 0x1a9   : > { %1826 = vmatpush.msra.mxu3 %v2241_v17 }
 0x1ab   : > { %1827 = vmatpush.msra.mxu3 %v2240_v20 }
 0x1ad   : > { %1828 = vmatpush.msra.mxu3 %v2239_v25 }
 0x1af   : > { %1829 = vmatpush.msra.mxu3 %v2238_v29 }
 0x1c8   : > { %v1369_v54 = vpop.f32.mrf.mxu0 }
 0x1d0   : > { %v1372_v50 = vpop.f32.mrf.mxu0 }
 0x1df   : > { %v1412_v27 = vpop.f32.mrf.mxu1 }
 0x1e0   : > { %v1413_v48 = vadd.f32 %v1412_v27, %v1369_v54 }
 0x1e7   : > { %v1415_v44 = vpop.f32.mrf.mxu1 }
 0x1e8   : > { %v1416_v45 = vadd.f32 %v1415_v44, %v1372_v50 }
 0x1fc   : > { %v1478_v55 = vpop.f32.mrf.mxu2 }
 0x1fd   : > { %v1484_v49 = vadd.f32 %v1478_v55, %v1413_v48 }
 0x204   : > { %v1481_v59 = vpop.f32.mrf.mxu2 }
 0x205   : > { %v1485_v4 = vadd.f32 %v1481_v59, %v1416_v45 }
 0x223   : > { %v1558_v19 = vpop.f32.mrf.mxu3 }
 0x224   : > { %v1564_v22 = vadd.f32 %v1558_v19, %v1484_v49 }
 0x226   : > { %v1570_v23 = vadd.f32 %v2268_v51, %v1564_v22 }
 0x228   : > { %v1572_v52 = vmax.f32 %v1570_v23, 0.0 }
 0x22a   : > { %2192 = vmatmul.msk.f32.vlgmr.msrb.gmra.mxu1 %vm464_vm0, %v1572_v52  ;;  %v1592_v57 = vrot.slane %v1572_v52, 1  ;;  %v1646_v39 = vrot.slane %v1572_v52, 2  ;;  %v1679_v58 = vrot.slane %v1572_v52, 3  ;;  %v1745_v28 = vrot.slane %v1572_v52, 5 }
 0x22b   : > { %v1561_v63 = vpop.f32.mrf.mxu3  ;;  %v1712_v32 = vrot.slane %v1572_v52, 4  ;;  %v1778_v33 = vrot.slane %v1572_v52, 6  ;;  %v1811_v35 = vrot.slane %v1572_v52, 7 }
 0x22c   : > { %2191 = vmatmul.msk.f32.vlgmr.msrb.gmra.mxu0 %vm464_vm0, %v1592_v57  ;;  %2201 = vmatmul.msk.f32.vlgmr.msrb.gmra.mxu2 %vm464_vm0, %v1646_v39  ;;  %v1565_v31 = vadd.f32 %v1561_v63, %v1485_v4 }
 0x22d   : > { %2210 = vmatmul.msk.f32.vlgmr.msrb.gmra.mxu3 %vm464_vm0, %v1679_v58  ;;  %1855 = vmatpush.msrb.mxu0 %v2254_v3 }
 0x22e   : > { %v1571_v37 = vadd.f32 %v2268_v51, %v1565_v31 }
 0x22f   : > { %1856 = vmatpush.msrb.mxu0 %v2253_v7 }
 0x230   : > { %v1573_v41 = vmax.f32 %v1571_v37, 0.0 }
 0x231   : > { %1857 = vmatpush.msrb.mxu0 %v2252_v10 }
 0x232   : > { %2228 = vmatmul.msk.f32.vlgmr.msra.gmra.mxu1 %vm464_vm0, %v1745_v28 }
 0x233   : > { %1858 = vmatpush.msrb.mxu0 %v2251_v30 }
 0x234   : > { %2219 = vmatmul.msk.f32.vlgmr.msra.gmra.mxu0 %vm464_vm0, %v1712_v32  ;;  %2237 = vmatmul.msk.f32.vlgmr.msra.gmra.mxu2 %vm464_vm0, %v1778_v33 }
 0x235   : > { %2246 = vmatmul.msk.f32.vlgmr.msra.gmra.mxu3 %vm464_vm0, %v1811_v35  ;;  %1859 = vmatpush.msrb.mxu0 %v2250_v34 }
 0x237   : > { %1860 = vmatpush.msrb.mxu0 %v2249_v36 }
 0x239   : > { %1861 = vmatpush.msrb.mxu0 %v2248_v38 }
 0x23b   : > { %1862 = vmatpush.msrb.mxu0 %v2247_v40 }
 0x23c   : > { %2255 = vmatmul.msk.f32.vlgmr.msrb.gmra.mxu0 %vm464_vm0, %v1573_v41 }
 0x2a7   : > { %v1634_v46 = vpop.f32.mrf.mxu1 }
 0x2a9   : > { %v1612_v42 = vpop.f32.mrf.mxu0 }
 0x2aa   : > { %v1635_v47 = vadd.f32 %v1634_v46, %v1612_v42 }
 0x2af   : > { %v1666_v53 = vpop.f32.mrf.mxu2  ;;  %v1765_v1 = vpop.f32.mrf.mxu1 }
 0x2b0   : > { %v1669_v56 = vadd.f32 %v1666_v53, %v1635_v47  ;;  %v1699_v60 = vpop.f32.mrf.mxu3 }
 0x2b1   : > { %v1732_v61 = vpop.f32.mrf.mxu0 }
 0x2b2   : > { %v1702_v62 = vadd.f32 %v1699_v60, %v1669_v56 }
 0x2b4   : > { %v1735_v0 = vadd.f32 %v1732_v61, %v1702_v62 }
 0x2b6   : > { %v1768_v2 = vadd.f32 %v1765_v1, %v1735_v0 }
 0x2b7   : > { %v1798_v5 = vpop.f32.mrf.mxu2 }
 0x2b8   : > { %v1801_v6 = vadd.f32 %v1798_v5, %v1768_v2  ;;  %v1831_v8 = vpop.f32.mrf.mxu3 }
 0x2b9   : > { %v1864_v11 = vpop.f32.mrf.mxu0 }
 0x2ba   : > { %v1834_v9 = vadd.f32 %v1831_v8, %v1801_v6 }
 0x2bc   : > { %v1867_v13 = vadd.f32 %v1864_v11, %v1834_v9 }
 0x2be   : > { %v1869_v14 = vadd.f32 %v1868_v12, %v1867_v13 }
 0x2c0   : > { %v1870_v15 = vmax.f32 %v1869_v14, 0.0 }
 0x2c2   : > { %1872 = vst.msk [vmem:[%s415_s15] sm:$0x1] %vm1871_vm4, %v1870_v15 }
 0x2c3 PF: > { %s20_s13 = sadd.s32 1, %s2275_s13  }
 0x2c4   : > { %p17_p4 = scmp.ge.s32.totalorder %s20_s13, 4  }
 0x2c6   :  { %19 = sbr.rel (!%p17_p4) target bundleno = 1 (0x1), region = 213 }

</bundles_post_ra>
